<compile_context>
chip_gen: v7x
topology: tpu7x:2x2x1
jax: 0.10.0
libtpu: 0.0.40
codegen_flags: <defaults>
</compile_context>

<pallas_src>
import numpy as np
import jax
import jax.numpy as jnp
from jax.experimental import pallas as pl
from jax.experimental.pallas import tpu as pltpu


# ----------------------------- config ---------------------------------------
SR = 22050
WIN_LENGTH = 1024
HOP_LENGTH = 256
N_FFT = 1024
F_MIN = 0.0
F_MAX = 8000.0
N_MELS = 80
POWER = 1.0                      # magnitude spectrogram
CLAMP_MIN = 1e-5

N_FREQ = N_FFT // 2 + 1          # 513 one-sided bins
N_SHIFTS = N_FFT // HOP_LENGTH   # 4 hop-chunks per frame
N_MELS_PAD = 128                 # 80 -> 128 (lane-dense output)
TM_MAX = 512                     # frames per grid step (review: 256 -> 512)
MXU_DTYPE = jnp.bfloat16         # MXU inputs; elementwise math stays f32


def _round_up(x, m):
    return ((x + m - 1) // m) * m


# --------------------- deterministic parameter setup ------------------------
def _hz_to_mel_slaney(f):
    f = np.asarray(f, dtype=np.float64)
    f_sp = 200.0 / 3.0
    mels = f / f_sp
    min_log_hz = 1000.0
    min_log_mel = min_log_hz / f_sp
    logstep = np.log(6.4) / 27.0
    return np.where(f >= min_log_hz,
                    min_log_mel + np.log(np.maximum(f, 1e-10) / min_log_hz) / logstep,
                    mels)


def _mel_to_hz_slaney(m):
    m = np.asarray(m, dtype=np.float64)
    f_sp = 200.0 / 3.0
    freqs = f_sp * m
    min_log_hz = 1000.0
    min_log_mel = min_log_hz / f_sp
    logstep = np.log(6.4) / 27.0
    return np.where(m >= min_log_mel,
                    min_log_hz * np.exp(logstep * (m - min_log_mel)),
                    freqs)


def librosa_mel_filterbank(sr, n_fft, n_mels, fmin, fmax):
    """Reproduces librosa.filters.mel (htk=False, norm='slaney'). Shape [n_mels, n_freq]."""
    n_freq = n_fft // 2 + 1
    fftfreqs = np.linspace(0.0, sr / 2.0, n_freq)
    mel_pts = _mel_to_hz_slaney(
        np.linspace(_hz_to_mel_slaney(fmin), _hz_to_mel_slaney(fmax), n_mels + 2))
    fdiff = np.diff(mel_pts)
    ramps = mel_pts[:, None] - fftfreqs[None, :]
    weights = np.zeros((n_mels, n_freq), dtype=np.float64)
    for i in range(n_mels):
        lower = -ramps[i] / fdiff[i]
        upper = ramps[i + 2] / fdiff[i + 1]
        weights[i] = np.maximum(0.0, np.minimum(lower, upper))
    enorm = 2.0 / (mel_pts[2:n_mels + 2] - mel_pts[:n_mels])  # slaney area norm
    weights *= enorm[:, None]
    return weights


def hann_window_periodic(win_length):
    n = np.arange(win_length)
    return 0.5 * (1.0 - np.cos(2.0 * np.pi * n / win_length))


_FB_FULL = librosa_mel_filterbank(SR, N_FFT, N_MELS, F_MIN, F_MAX)   # [n_mels, n_freq]
# Highest frequency bin with nonzero mel weight, derived from the filterbank's
# actual support (NOT hardcoded): bins above it contribute exactly zero.
_nz = np.nonzero(np.any(_FB_FULL > 0.0, axis=0))[0]
N_FREQ_USED = int(_nz[-1]) + 1 if _nz.size else N_FREQ
N_FREQ_PAD = _round_up(N_FREQ_USED, 128)          # 384 for this config (was 640)
N_FREQ_KEEP = min(N_FREQ, N_FREQ_PAD)             # real bins retained in basis/fb


def build_windowed_dft_basis():
    """Window-folded, truncated [n_fft, 2*N_FREQ_PAD] basis: [cos_w | sin_w]."""
    n = np.arange(N_FFT)[:, None]
    k = np.arange(N_FREQ_KEEP)[None, :]
    ang = 2.0 * np.pi * n * k / N_FFT
    window = hann_window_periodic(WIN_LENGTH)[:, None]     # win_length == n_fft
    basis = np.zeros((N_FFT, 2 * N_FREQ_PAD), dtype=np.float64)
    basis[:, :N_FREQ_KEEP] = window * np.cos(ang)          # X_re = x @ cos_w
    basis[:, N_FREQ_PAD:N_FREQ_PAD + N_FREQ_KEEP] = window * np.sin(ang)  # |X_im|
    return basis


def build_padded_mel_fb():
    """Mel filterbank transposed, freq-truncated and zero-padded to [N_FREQ_PAD, N_MELS_PAD]."""
    fb = _FB_FULL.T                                        # [n_freq, n_mels]
    out = np.zeros((N_FREQ_PAD, N_MELS_PAD), dtype=np.float64)
    out[:N_FREQ_KEEP, :N_MELS] = fb[:N_FREQ_KEEP]
    return out


# ----------------------------- Pallas kernel --------------------------------
def mel_kernel(main_ref, halo_ref, basis_ref, fb_ref, out_ref, wbuf_ref):
    # main_ref : [tm, HOP]            f32   -- tm hop-chunks of padded audio
    # halo_ref : [8, HOP]             f32   -- next 8 chunks (only 3 are used)
    # basis_ref: [n_fft, 2*F_PAD]     bf16  -- Hann folded in, cos|sin concat
    # fb_ref   : [F_PAD, M_PAD]       bf16  -- truncated/padded mel filterbank
    # out_ref  : [M_PAD, tm]          f32   -- transposed log-mel tile
    # wbuf_ref : [tm+8, HOP]          f32   -- contiguous chunk window scratch
    tm = main_ref.shape[0]
    n_halo = halo_ref.shape[0]

    # Assemble the contiguous chunk window for this tile (aligned stores).
    wbuf_ref[pl.ds(0, tm), :] = main_ref[...]
    wbuf_ref[pl.ds(tm, n_halo), :] = halo_ref[...]

    # Windowed DFT as a sum of 4 hop-shifted partial matmuls: frame t is the
    # concat of chunks t..t+3, so frames @ basis == sum_j view_j @ basis_j.
    ri = None
    for j in range(N_SHIFTS):
        v = wbuf_ref[pl.ds(j, tm), :].astype(MXU_DTYPE)               # [tm, HOP]
        bj = basis_ref[pl.ds(j * HOP_LENGTH, HOP_LENGTH), :]          # [HOP, 2*F_PAD]
        part = jnp.dot(v, bj, preferred_element_type=jnp.float32)     # MXU, f32 acc
        ri = part if ri is None else ri + part                        # [tm, 2*F_PAD]

    re = ri[:, :N_FREQ_PAD]
    im = ri[:, N_FREQ_PAD:]
    mag = jnp.sqrt(re * re + im * im)                                 # power=1.0, f32
    # TODO(synk): v6e micro-opt — block the frequency axis and fuse mag + mel
    # accumulation to avoid materializing the full [tm, 2*F_PAD] f32 intermediate.
    mel = jnp.dot(mag.astype(MXU_DTYPE), fb_ref[...],
                  preferred_element_type=jnp.float32)                 # bf16 MXU, f32 acc
    logmel = jnp.log(jnp.maximum(mel, CLAMP_MIN))                     # clamp_(1e-5).log_()
    out_ref[...] = logmel.T                                           # lane-dense store


def mel_spectrogram(audio: jnp.ndarray) -> jnp.ndarray:
    """audio: [B, T] float32  ->  log-mel: [B, n_mels, T'] with T' = 1 + T // hop."""
    B, T = audio.shape
    audio = audio.astype(jnp.float32)
    pad = N_FFT // 2
    n_frames = 1 + T // HOP_LENGTH

    tm = min(TM_MAX, _round_up(n_frames, 8))      # avoid huge pad waste for tiny inputs
    n_tiles = pl.cdiv(n_frames, tm)
    n_rows = n_tiles * tm + 8                     # chunk rows incl. the 8-row halo tail

    # --- glue (plain JAX): reflect pad (torch.stft center=True) + reshape into
    # hop-sized chunks.  No frame materialization: framing happens in the kernel.
    audio_p = jnp.pad(audio, ((0, 0), (pad, pad)), mode="reflect")
    audio_p = jnp.pad(audio_p, ((0, 0), (0, n_rows * HOP_LENGTH - audio_p.shape[1])))
    chunks = audio_p.reshape(B, n_rows, HOP_LENGTH)                   # [B, R, HOP] f32

    # --- deterministic constant operands (resident in VMEM across all grid steps)
    basis = jnp.asarray(build_windowed_dft_basis(), MXU_DTYPE)        # [n_fft, 2*F_PAD]
    fb = jnp.asarray(build_padded_mel_fb(), MXU_DTYPE)                # [F_PAD, M_PAD]

    main_spec = pl.BlockSpec((None, tm, HOP_LENGTH), lambda b, i: (b, i, 0))
    halo_spec = pl.BlockSpec((None, 8, HOP_LENGTH),
                             lambda b, i: (b, (i + 1) * (tm // 8), 0))
    basis_spec = pl.BlockSpec((N_FFT, 2 * N_FREQ_PAD), lambda b, i: (0, 0))
    fb_spec = pl.BlockSpec((N_FREQ_PAD, N_MELS_PAD), lambda b, i: (0, 0))
    out_spec = pl.BlockSpec((None, N_MELS_PAD, tm), lambda b, i: (b, 0, i))

    out = pl.pallas_call(
        mel_kernel,
        out_shape=jax.ShapeDtypeStruct((B, N_MELS_PAD, n_tiles * tm), jnp.float32),
        grid_spec=pltpu.PrefetchScalarGridSpec(
            num_scalar_prefetch=0,
            grid=(B, n_tiles),
            in_specs=[main_spec, halo_spec, basis_spec, fb_spec],
            out_specs=out_spec,
            scratch_shapes=[pltpu.VMEM((tm + 8, HOP_LENGTH), jnp.float32)],
        ),
        compiler_params=pltpu.CompilerParams(
            dimension_semantics=("parallel", "parallel"),   # shards tiles across v7x's 2 TCs
            vmem_limit_bytes=32 << 20,
        ),
    )(chunks, chunks, basis, fb)

    # Transposed kernel output means no minor-dim transpose here: just slice off
    # the mel / frame padding (padded entries are log(1e-5) and discarded).
    return out[:, :N_MELS, :n_frames]


if __name__ == "__main__":
    key = jax.random.PRNGKey(0)
    B, T = 2, 2048                       # T' = 1 + 2048 // 256 = 9 frames
    audio = jax.random.normal(key, (B, T), dtype=jnp.float32)

    mel = mel_spectrogram(audio)
    jax.block_until_ready(mel)
    assert mel.shape == (B, N_MELS, 1 + T // HOP_LENGTH), mel.shape
    assert bool(jnp.all(jnp.isfinite(mel)))
    print("KERNEL_OK")
</pallas_src>

<mosaic_0001>
module attributes {stable_mosaic.version = 11 : i64} {
  func.func @mel_kernel(%arg0: i32, %arg1: i32, %arg2: memref<1x16x256xf32, #tpu.memory_space<vmem>>, %arg3: memref<1x8x256xf32, #tpu.memory_space<vmem>>, %arg4: memref<1024x768xbf16, #tpu.memory_space<vmem>>, %arg5: memref<384x128xbf16, #tpu.memory_space<vmem>>, %arg6: memref<1x128x16xf32, #tpu.memory_space<vmem>>, %arg7: memref<24x256xf32, #tpu.memory_space<vmem>>) attributes {dimension_semantics = [#tpu.dimension_semantics<parallel>, #tpu.dimension_semantics<parallel>], iteration_bounds = array<i64: 2, 1>, scalar_prefetch = 0 : i64, scratch_operands = 1 : i64, tpu.core_type = #tpu.core_type<tc>, window_params = [{transform_indices = @transform_0, window_bounds = array<i64: 1, 16, 256>}, {transform_indices = @transform_1, window_bounds = array<i64: 1, 8, 256>}, {pipeline_mode = #tpu.pipeline_mode<synchronous>, transform_indices = @transform_2, window_bounds = array<i64: 1024, 768>}, {pipeline_mode = #tpu.pipeline_mode<synchronous>, transform_indices = @transform_3, window_bounds = array<i64: 384, 128>}, {transform_indices = @transform_4, window_bounds = array<i64: 1, 128, 16>}]} {
    %c0 = arith.constant 0 : index
    %c0_0 = arith.constant 0 : index
    %c0_1 = arith.constant 0 : index
    %0 = vector.load %arg2[%c0, %c0_0, %c0_1] : memref<1x16x256xf32, #tpu.memory_space<vmem>>, vector<1x16x256xf32>
    %1 = vector.shape_cast %0 : vector<1x16x256xf32> to vector<16x256xf32>
    %c0_2 = arith.constant 0 : index
    %c0_3 = arith.constant 0 : index
    %2 = vector.load %arg7[%c0_2, %c0_3] : memref<24x256xf32, #tpu.memory_space<vmem>>, vector<16x256xf32>
    tpu.vector_store %arg7[%c0_2, %c0_3], %1 {strides = array<i32>} : memref<24x256xf32, #tpu.memory_space<vmem>>, vector<16x256xf32>,
    %c0_4 = arith.constant 0 : index
    %c0_5 = arith.constant 0 : index
    %c0_6 = arith.constant 0 : index
    %3 = vector.load %arg3[%c0_4, %c0_5, %c0_6] : memref<1x8x256xf32, #tpu.memory_space<vmem>>, vector<1x8x256xf32>
    %4 = vector.shape_cast %3 : vector<1x8x256xf32> to vector<8x256xf32>
    %c16 = arith.constant 16 : index
    %c0_7 = arith.constant 0 : index
    %5 = vector.load %arg7[%c16, %c0_7] : memref<24x256xf32, #tpu.memory_space<vmem>>, vector<8x256xf32>
    tpu.vector_store %arg7[%c16, %c0_7], %4 {strides = array<i32>} : memref<24x256xf32, #tpu.memory_space<vmem>>, vector<8x256xf32>,
    %c0_8 = arith.constant 0 : index
    %c0_9 = arith.constant 0 : index
    %6 = vector.load %arg7[%c0_8, %c0_9] : memref<24x256xf32, #tpu.memory_space<vmem>>, vector<16x256xf32>
    %7 = arith.truncf %6 : vector<16x256xf32> to vector<16x256xbf16>
    %c0_10 = arith.constant 0 : index
    %c0_11 = arith.constant 0 : index
    %8 = vector.load %arg4[%c0_10, %c0_11] : memref<1024x768xbf16, #tpu.memory_space<vmem>>, vector<256x768xbf16>
    %cst = arith.constant dense<0.000000e+00> : vector<16x768xf32>
    %9 = tpu.matmul %7, %8, %cst {dimension_numbers = #tpu.dot_dimension_numbers<[1], [0], [0], [1], [0, 0, 1, 1], [], []>} : vector<16x256xbf16>, vector<256x768xbf16>, vector<16x768xf32> -> vector<16x768xf32>
    %c1 = arith.constant 1 : index
    %c0_12 = arith.constant 0 : index
    %10 = vector.load %arg7[%c1, %c0_12] : memref<24x256xf32, #tpu.memory_space<vmem>>, vector<16x256xf32>
    %11 = arith.truncf %10 : vector<16x256xf32> to vector<16x256xbf16>
    %c256 = arith.constant 256 : index
    %c0_13 = arith.constant 0 : index
    %12 = vector.load %arg4[%c256, %c0_13] : memref<1024x768xbf16, #tpu.memory_space<vmem>>, vector<256x768xbf16>
    %cst_14 = arith.constant dense<0.000000e+00> : vector<16x768xf32>
    %13 = tpu.matmul %11, %12, %cst_14 {dimension_numbers = #tpu.dot_dimension_numbers<[1], [0], [0], [1], [0, 0, 1, 1], [], []>} : vector<16x256xbf16>, vector<256x768xbf16>, vector<16x768xf32> -> vector<16x768xf32>
    %14 = arith.addf %9, %13 : vector<16x768xf32>
    %c2 = arith.constant 2 : index
    %c0_15 = arith.constant 0 : index
    %15 = vector.load %arg7[%c2, %c0_15] : memref<24x256xf32, #tpu.memory_space<vmem>>, vector<16x256xf32>
    %16 = arith.truncf %15 : vector<16x256xf32> to vector<16x256xbf16>
    %c512 = arith.constant 512 : index
    %c0_16 = arith.constant 0 : index
    %17 = vector.load %arg4[%c512, %c0_16] : memref<1024x768xbf16, #tpu.memory_space<vmem>>, vector<256x768xbf16>
    %cst_17 = arith.constant dense<0.000000e+00> : vector<16x768xf32>
    %18 = tpu.matmul %16, %17, %cst_17 {dimension_numbers = #tpu.dot_dimension_numbers<[1], [0], [0], [1], [0, 0, 1, 1], [], []>} : vector<16x256xbf16>, vector<256x768xbf16>, vector<16x768xf32> -> vector<16x768xf32>
    %19 = arith.addf %14, %18 : vector<16x768xf32>
    %c3 = arith.constant 3 : index
    %c0_18 = arith.constant 0 : index
    %20 = vector.load %arg7[%c3, %c0_18] : memref<24x256xf32, #tpu.memory_space<vmem>>, vector<16x256xf32>
    %21 = arith.truncf %20 : vector<16x256xf32> to vector<16x256xbf16>
    %c768 = arith.constant 768 : index
    %c0_19 = arith.constant 0 : index
    %22 = vector.load %arg4[%c768, %c0_19] : memref<1024x768xbf16, #tpu.memory_space<vmem>>, vector<256x768xbf16>
    %cst_20 = arith.constant dense<0.000000e+00> : vector<16x768xf32>
    %23 = tpu.matmul %21, %22, %cst_20 {dimension_numbers = #tpu.dot_dimension_numbers<[1], [0], [0], [1], [0, 0, 1, 1], [], []>} : vector<16x256xbf16>, vector<256x768xbf16>, vector<16x768xf32> -> vector<16x768xf32>
    %24 = arith.addf %19, %23 : vector<16x768xf32>
    %25 = vector.extract_strided_slice %24 {offsets = [0, 0], sizes = [16, 384], strides = [1, 1]} : vector<16x768xf32> to vector<16x384xf32>
    %26 = vector.extract_strided_slice %24 {offsets = [0, 384], sizes = [16, 384], strides = [1, 1]} : vector<16x768xf32> to vector<16x384xf32>
    %27 = arith.mulf %25, %25 : vector<16x384xf32>
    %28 = arith.mulf %26, %26 : vector<16x384xf32>
    %29 = arith.addf %27, %28 : vector<16x384xf32>
    %30 = math.sqrt %29 : vector<16x384xf32>
    %31 = arith.truncf %30 : vector<16x384xf32> to vector<16x384xbf16>
    %c0_21 = arith.constant 0 : index
    %c0_22 = arith.constant 0 : index
    %32 = vector.load %arg5[%c0_21, %c0_22] : memref<384x128xbf16, #tpu.memory_space<vmem>>, vector<384x128xbf16>
    %cst_23 = arith.constant dense<0.000000e+00> : vector<16x128xf32>
    %33 = tpu.matmul %31, %32, %cst_23 {dimension_numbers = #tpu.dot_dimension_numbers<[1], [0], [0], [1], [0, 0, 1, 1], [], []>} : vector<16x384xbf16>, vector<384x128xbf16>, vector<16x128xf32> -> vector<16x128xf32>
    %cst_24 = arith.constant 9.99999974E-6 : f32
    %34 = vector.broadcast %cst_24 : f32 to vector<16x128xf32>
    %35 = arith.maximumf %33, %34 : vector<16x128xf32>
    %36 = math.log %35 : vector<16x128xf32>
    %37 = tpu.transpose %36, [1, 0] : vector<16x128xf32> -> vector<128x16xf32>
    %c0_25 = arith.constant 0 : index
    %c0_26 = arith.constant 0 : index
    %c0_27 = arith.constant 0 : index
    %38 = vector.load %arg6[%c0_25, %c0_26, %c0_27] : memref<1x128x16xf32, #tpu.memory_space<vmem>>, vector<1x128x16xf32>
    %39 = vector.shape_cast %38 : vector<1x128x16xf32> to vector<128x16xf32>
    %40 = vector.shape_cast %37 : vector<128x16xf32> to vector<1x128x16xf32>
    tpu.vector_store %arg6[%c0_25, %c0_26, %c0_27], %40 {strides = array<i32>} : memref<1x128x16xf32, #tpu.memory_space<vmem>>, vector<1x128x16xf32>,
    return
  }
  func.func @transform_0(%arg0: i32, %arg1: i32) -> (i32, i32, i32) {
    %c0_i32 = arith.constant 0 : i32
    %c0_i32_0 = arith.constant 0 : i32
    return %arg0, %arg1, %c0_i32 : i32, i32, i32
  }
  func.func @transform_1(%arg0: i32, %arg1: i32) -> (i32, i32, i32) {
    %c1_i32 = arith.constant 1 : i32
    %0 = arith.addi %arg1, %c1_i32 : i32
    %c2_i32 = arith.constant 2 : i32
    %1 = arith.muli %0, %c2_i32 : i32
    %c0_i32 = arith.constant 0 : i32
    %c0_i32_0 = arith.constant 0 : i32
    return %arg0, %1, %c0_i32 : i32, i32, i32
  }
  func.func @transform_2(%arg0: i32, %arg1: i32) -> (i32, i32) {
    %c0_i32 = arith.constant 0 : i32
    %c0_i32_0 = arith.constant 0 : i32
    %c0_i32_1 = arith.constant 0 : i32
    return %c0_i32, %c0_i32_0 : i32, i32
  }
  func.func @transform_3(%arg0: i32, %arg1: i32) -> (i32, i32) {
    %c0_i32 = arith.constant 0 : i32
    %c0_i32_0 = arith.constant 0 : i32
    %c0_i32_1 = arith.constant 0 : i32
    return %c0_i32, %c0_i32_0 : i32, i32
  }
  func.func @transform_4(%arg0: i32, %arg1: i32) -> (i32, i32, i32) {
    %c0_i32 = arith.constant 0 : i32
    %c0_i32_0 = arith.constant 0 : i32
    return %arg0, %c0_i32, %arg1 : i32, i32, i32
  }
}

</mosaic_0001>

<bundles_post_ra>
// kernel: tpu_custom_call.1
= control target key start
LH: loop header
LB: loop body
LE: loop exit
PB: predicated region body
PF: predicated region fallthrough
CT: control target
= control target key end

     0   :  { %s5648_s0 = inlined_call_operand.hbm [shape: f32[2,24,256], index: 0, kind: input, shape index: {}]   ;;  %s5649_s1 = inlined_call_operand.hbm [shape: f32[2,24,256], index: 1, kind: input, shape index: {}]   ;;  %s5650_s2 = inlined_call_operand.hbm [shape: bf16[1024,768], index: 2, kind: input, shape index: {}]   ;;  %s5651_s3 = inlined_call_operand.hbm [shape: bf16[384,128], index: 3, kind: input, shape index: {}]   ;;  %s5652_s4 = inlined_call_operand.vmem [shape: f32[2,128,16], index: 4, kind: output, shape index: {}]  }
   0x1   :  { %5658 = sst [smem:[#allocation14_spill]] %s5648_s0 }
   0x2   :  { %5659 = sst [smem:[#allocation15_spill]] %s5650_s2 }
   0x3   :  { %9 = vsyncpa [#allocation4], 0 }
   0x4   :  { %11 = vsyncpa [#allocation4 + $0x1], 0 }
   0x5   :  { %12 = vsyncpa [#allocation6], 0 }
   0x6   :  { %14 = vsyncpa [#allocation6 + $0x1], 0 }
   0x7   :  { %15 = vsyncpa [#allocation9], 0  ;;  %s5272_s15 = smov 0   ;;  %s5274_s16 = smov 0  }
   0x8   :  { %s5276_s17 = smov 0   ;;  %s5278_s18 = smov 0  }
   0x9   :  { %s5280_s19 = smov 0   ;;  %s5282_s20 = smov 0  }
   0xa LB: > { %s5657_s21 = sadd.s32 4294967295, %s5233_s20   ;;  %p55_p0 = scmp.ne.s32.totalorder %s5217_s16, %s5213_s15  ;;  %s5233_s20 = sphi %s5282_s20, %s21_s20   ;;  %s5229_s19 = sphi %s5280_s19, %s5675_s19   ;;  %s5225_s18 = sphi %s5278_s18, %s5674_s18   ;;  %s5221_s17 = sphi %s5276_s17, %s5673_s17   ;;  %s5217_s16 = sphi %s5274_s16, %s5672_s16   ;;  %s5213_s15 = sphi %s5272_s15, %s5671_s15  }
   0xb   : > { %p5304_p1 = scmp.eq.s32.totalorder %s5657_s21, 0  ;;  %p3833_p2 = scmp.ge.s32.totalorder %s5233_s20, 1 }
   0xc   : > { %p168_p3 = scmp.lt.s32.totalorder %s5233_s20, 3  ;;  %s5235_s25 = smov [#allocation7]  }
   0xd   : > { %s5660_s22 = scalar_select %p5304_p1, 1, 0 }
   0xe   : > { %p5312_p4 = por %p5304_p1, %p55_p0  ;;  %p5316_p5 = pnand %p3833_p2, %p168_p3 }
   0xf   : > { %s180_s26 = sshll.u32 %s5235_s25, 4  ;;  %s5236_s28 = smov [#allocation8]   ;;  %s181_s26 = int_to_ptr.vmem [resolvable:$true] %s180_s26 }
  0x10   : > { %s5661_s23 = scalar_select %p5312_p4, 1, 0 }
  0x11   : > { %s5662_s24 = scalar_select %p5316_p5, 1, 0 }
  0x12   : > { %p4359_p6 = pneg %p5316_p5  ;;  %s193_s29 = sshll.u32 %s5236_s28, 4  ;;  %s5328_s29 = int_to_ptr.vmem [resolvable:$true] %s193_s29 }
  0x13   : > { %s5664_s2 = sld [smem:[#allocation15_spill]] }
  0x14   : > { %p5324_p7 = pnand %p4359_p6, %p5304_p1 }
  0x16   : > { %p5056_p9 = pneg %p5324_p7 }
  0x19   : > { %s5054_s6 = scalar_lea.hbm %s5664_s2, 49152 }
  0x1a   : > { %p5055_p8 = scmp.ne.s32.totalorder %s5664_s2, %s5054_s6  ;;  %p5061_p12 = scmp.lt.u32.totalorder %s5054_s6, %s5664_s2 }
  0x1c   : > { %p5057_p10 = pnand %p5056_p9, %p5055_p8 }
  0x1e   : > { %p5058_p11 = pneg %p5057_p10 }
  0x20   : > { %p5063_p13 = pnand %p5061_p12, %p5058_p11 }
  0x22   : > { %5066 = shalt.err (!%p5063_p13)
}
  0x23   : > { %s5067_s11 = scalar_lea.vmem %s181_s26, 49152  ;;  %p5075_p6 = scmp.lt.s32.totalorder %s181_s26, %s181_s26 }
  0x24   : > { %p5068_p0 = scmp.ne.s32.totalorder %s181_s26, %s5067_s11  ;;  %p5076_p1 = scmp.lt.s32.totalorder %s5067_s11, %s5067_s11 }
  0x26   : > { %p5070_p2 = pnand %p5068_p0, %p5056_p9  ;;  %p5077_p4 = por %p5076_p1, %p5075_p6 }
  0x28   : > { %p5071_p3 = pneg %p5070_p2 }
  0x2a   : > { %p5078_p5 = pnand %p5077_p4, %p5071_p3 }
  0x2c   : > { %5081 = shalt.err (!%p5078_p5)
}
  0x2d   : > { %s5237_s12 = smov 384   ;;  %s5238_s13 = smov 24  }
  0x2e   : > { %4362 = dma.hbm_to_vmem [thread:$0]  (!%p5324_p7), %s5664_s2, 49152, %s181_s26, [#allocation6], %s5237_s12, %s5237_s12, %s5238_s13  }
  0x2f   : > { %s5082_s30 = scalar_lea.hbm %s5651_s3, 3072 }
  0x30   : > { %p5083_p8 = scmp.ne.s32.totalorder %s5651_s3, %s5082_s30  ;;  %p5089_p5 = scmp.lt.u32.totalorder %s5082_s30, %s5651_s3 }
  0x32   : > { %p5085_p1 = pnand %p5083_p8, %p5056_p9 }
  0x34   : > { %p5086_p4 = pneg %p5085_p1 }
  0x36   : > { %p5091_p10 = pnand %p5089_p5, %p5086_p4 }
  0x38   : > { %5094 = shalt.err (!%p5091_p10)
}
  0x39   : > { %s5095_s26 = scalar_lea.vmem %s5328_s29, 3072  ;;  %p5103_p0 = scmp.lt.s32.totalorder %s5328_s29, %s5328_s29 }
  0x3a   : > { %p5096_p11 = scmp.ne.s32.totalorder %s5328_s29, %s5095_s26  ;;  %p5104_p2 = scmp.lt.s32.totalorder %s5095_s26, %s5095_s26 }
  0x3c   : > { %p5098_p12 = pnand %p5096_p11, %p5056_p9  ;;  %p5105_p3 = por %p5104_p2, %p5103_p0 }
  0x3e   : > { %p5099_p13 = pneg %p5098_p12 }
  0x40   : > { %p5106_p6 = pnand %p5105_p3, %p5099_p13 }
  0x42   : > { %5109 = shalt.err (!%p5106_p6)
}
  0x43   : > { %s5239_s9 = smov 64   ;;  %s5240_s10 = smov 4  }
  0x44   : > { %4365 = dma.hbm_to_vmem [thread:$0]  (!%p5324_p7), %s5651_s3, 3072, %s5328_s29, [#allocation9], %s5239_s9, %s5239_s9, %s5240_s10  }
  0x45   : > { %s33_s13 = sadd.s32 1, %s5229_s19  ;;  %s42_s14 = sadd.s32 1, %s5221_s17 }
  0x46   : > { %p35_p9 = scmp.ge.s32.totalorder %s33_s13, 2  ;;  %p49_p8 = scmp.ne.s32.totalorder %s5221_s17, %s5217_s16 }
  0x47   : > { %p50_p1 = scmp.eq.s32.totalorder %s5233_s20, 0  ;;  %p4375_p4 = scmp.lt.s32.totalorder %s5233_s20, 2 }
  0x48   : > { %s5677_s13 = smov (%p35_p9, %s33_s13), 0  ;;  %s5386_s15 = sand.u32 1, %s5221_s17  }
  0x49   : > { %p51_p5 = por %p50_p1, %p49_p8  ;;  %s37_s27 = ssub.s32 %s5229_s19, %s5677_s13 }
  0x4a   : > { %p40_p10 = scmp.eq.s32.totalorder %s37_s27, 0  ;;  %s3837_s25 = sshll.u32 %s5386_s15, 5 }
  0x4b   : > { %s4346_s29 = smul.u32 768, %s5229_s19  ;;  %s5665_s0 = sld [smem:[#allocation14_spill]] }
  0x4c   : > { %s5393_s28 = scalar_select %p40_p10, %s5221_s17, %s42_s14  }
  0x4d   : > { %s211_s7 = scalar_lea.vmem [#allocation3], %s3837_s25  ;;  %p5406_p7 = pnand %p4375_p4, %p51_p5 }
  0x4e   : > { %s228_s8 = sshll.u32 %s211_s7, 4  ;;  %s238_s9 = sand.u32 1, %s5233_s20   ;;  %s5402_s8 = int_to_ptr.vmem [resolvable:$true] %s228_s8 }
  0x4f   : > { %s208_s10 = scalar_lea.sflag [#allocation4], %s5386_s15  ;;  %p5112_p12 = pneg %p5406_p7 }
  0x51   : > { %s5400_s6 = scalar_lea.hbm %s5665_s0, %s4346_s29  ;;  %s5115_s27 = scalar_lea.hbm %s5665_s0, 1536 }
  0x52   : > { %s5110_s11 = scalar_lea.hbm %s5400_s6, 512  ;;  %p5116_p2 = scmp.lt.u32.totalorder %s5400_s6, %s5665_s0 }
  0x53   : > { %p5111_p11 = scmp.ne.s32.totalorder %s5400_s6, %s5110_s11  ;;  %p5117_p3 = scmp.lt.u32.totalorder %s5115_s27, %s5110_s11 }
  0x54   : > { %p5119_p9 = scmp.lt.u32.totalorder %s5110_s11, %s5400_s6 }
  0x55   : > { %p5113_p13 = pnand %p5112_p12, %p5111_p11  ;;  %p5118_p6 = por %p5117_p3, %p5116_p2 }
  0x57   : > { %p5114_p0 = pneg %p5113_p13  ;;  %p5120_p8 = por %p5119_p9, %p5118_p6 }
  0x59   : > { %p5121_p1 = pnand %p5120_p8, %p5114_p0 }
  0x5b   : > { %5124 = shalt.err (!%p5121_p1)
}
  0x5c   : > { %s5125_s5 = scalar_lea.vmem %s5402_s8, 512  ;;  %s5241_s7 = smov [#allocation3]  }
  0x5d   : > { %p5126_p4 = scmp.ne.s32.totalorder %s5402_s8, %s5125_s5  ;;  %s5130_s12 = sshll.u32 %s5241_s7, 4  ;;  %s5131_s12 = int_to_ptr.vmem [resolvable:$false] %s5130_s12 }
  0x5e   : > { %s5132_s14 = scalar_lea.vmem %s5131_s12, 1024  ;;  %p5133_p11 = scmp.lt.s32.totalorder %s5402_s8, %s5131_s12 }
  0x5f   : > { %p5128_p5 = pnand %p5126_p4, %p5112_p12  ;;  %p5134_p13 = scmp.lt.s32.totalorder %s5132_s14, %s5125_s5 }
  0x61   : > { %p5129_p10 = pneg %p5128_p5  ;;  %p5135_p2 = por %p5134_p13, %p5133_p11 }
  0x63   : > { %p5136_p3 = pnand %p5135_p2, %p5129_p10 }
  0x65   : > { %5139 = shalt.err (!%p5136_p3)
}
  0x66   : > { %s5242_s11 = smov 256   ;;  %s5243_s27 = smov 16  }
  0x67   : > { %4369 = dma.hbm_to_vmem [thread:$0]  (!%p5406_p7), %s5400_s6, 512, %s5402_s8, %s208_s10, %s5242_s11, %s5242_s11, %s5243_s27  }
  0x68   : > { %s3839_s25 = sshll.u32 %s5386_s15, 4  ;;  %s3742_s7 = scalar_lea.hbm %s5649_s1, %s4346_s29 }
  0x69   : > { %s5445_s12 = scalar_lea.hbm %s3742_s7, 512  ;;  %s242_s14 = scalar_lea.vmem [#allocation5], %s3839_s25 }
  0x6a   : > { %s254_s21 = sshll.u32 %s242_s14, 4  ;;  %s239_s0 = scalar_lea.sflag [#allocation6], %s238_s9  ;;  %s255_s21 = int_to_ptr.vmem [resolvable:$true] %s254_s21 }
  0x6b   : > { %s5170_s2 = scalar_lea.hbm %s3742_s7, 768  ;;  %s5145_s29 = scalar_lea.hbm %s5649_s1, 1536 }
  0x6c   : > { %p5141_p0 = scmp.ne.s32.totalorder %s5445_s12, %s5170_s2  ;;  %p5146_p8 = scmp.lt.u32.totalorder %s5445_s12, %s5649_s1 }
  0x6d   : > { %p5147_p1 = scmp.lt.u32.totalorder %s5145_s29, %s5170_s2  ;;  %p5149_p5 = scmp.lt.u32.totalorder %s5170_s2, %s5445_s12 }
  0x6e   : > { %p5143_p6 = pnand %p5141_p0, %p5112_p12 }
  0x6f   : > { %p5148_p4 = por %p5147_p1, %p5146_p8 }
  0x70   : > { %p5144_p9 = pneg %p5143_p6 }
  0x71   : > { %p5150_p10 = por %p5149_p5, %p5148_p4 }
  0x73   : > { %p5151_p11 = pnand %p5150_p10, %p5144_p9 }
  0x75   : > { %5154 = shalt.err (!%p5151_p11)
}
  0x76   : > { %s5155_s9 = scalar_lea.vmem %s255_s21, 256  ;;  %s5244_s11 = smov [#allocation5]  }
  0x77   : > { %p5156_p13 = scmp.ne.s32.totalorder %s255_s21, %s5155_s9  ;;  %s5160_s27 = sshll.u32 %s5244_s11, 4  ;;  %s5161_s27 = int_to_ptr.vmem [resolvable:$false] %s5160_s27 }
  0x78   : > { %s5162_s25 = scalar_lea.vmem %s5161_s27, 512  ;;  %p5163_p0 = scmp.lt.s32.totalorder %s255_s21, %s5161_s27 }
  0x79   : > { %p5158_p2 = pnand %p5156_p13, %p5112_p12  ;;  %p5164_p6 = scmp.lt.s32.totalorder %s5162_s25, %s5155_s9 }
  0x7b   : > { %p5159_p3 = pneg %p5158_p2  ;;  %p5165_p1 = por %p5164_p6, %p5163_p0 }
  0x7d   : > { %p5166_p8 = pnand %p5165_p1, %p5159_p3 }
  0x7f   : > { %5169 = shalt.err (!%p5166_p8)
}
  0x80   : > { %4372 = dma.hbm_to_vmem [thread:$0]  (!%p5406_p7), %s5445_s12, 256, %s255_s21, %s239_s0  }
  0x81   : > { %p5667_p9 = scmp.ne.s32.totalorder %s5662_s24, 0 }
  0x82   : > { %s265_s2 = sand.u32 (!%p5667_p9), 1, %s5217_s16   ;;  %p5668_p12 = scmp.ne.s32.totalorder (!%p5667_p9), %s5661_s23, 0 }
  0x83   : > { %263 = sbr.rel (%p5667_p9) target bundleno = 1284 (0x504), region = 36  ;;  %s3842_s30 = sshll.u32 (!%p5667_p9), %s265_s2, 5 }
  0x84   : > { %s266_s5 = scalar_lea.sflag (!%p5667_p9), [#allocation4], %s265_s2  ;;  %s5470_s7 = scalar_lea.vmem (!%p5667_p9), [#allocation3], %s3842_s30 }
  0x8a   : > { %5196 = dma.done.wait (%p5668_p12), %s266_s5, 512  }
  0x8b   : > { %5198 = vsyncadd (%p5668_p12), %s266_s5, 4294966784  ;;  %s5669_s14 = sadd.s32 4294967295, %s5233_s20   ;;  %s3843_s0 = sshll.u32 %s265_s2, 4 }
  0x8c   : > { %s274_s26 = sand.u32 1, %s5669_s14   ;;  %s5478_s24 = scalar_lea.vmem [#allocation5], %s3843_s0 }
  0x8d   : > { %s275_s21 = scalar_lea.sflag [#allocation6], %s274_s26 }
  0x8e   : > { %5200 = dma.done.wait (%p5668_p12), %s275_s21, 256  }
  0x8f   : > { %5202 = vsyncadd (%p5668_p12), %s275_s21, 4294967040  ;;  %p5670_p7 = scmp.ne.s32.totalorder %s5660_s22, 0 }
  0x91   : > { %5204 = dma.done.wait (%p5670_p7), [#allocation6], 49152  }
  0x92   : > { %5206 = vsyncadd (%p5670_p7), [#allocation6], 4294918144 }
  0x93   : > { %5208 = dma.done.wait (%p5670_p7), [#allocation9], 3072  }
  0x94   : > { %5210 = vsyncadd (%p5670_p7), [#allocation9], 4294964224  ;;  %v4436_v0 = vld [vmem:[#allocation7 + $0x304] ss:$24 sps:$4 sm:$0xff]   ;;  %v4438_v1 = vld [vmem:[#allocation7 + $0x314] ss:$24 sps:$4 sm:$0xff]  }
  0x95   : > { %1063 = vmatprep.subr.bf16.mxu1 %v4436_v0  ;;  %v4440_v2 = vld [vmem:[#allocation7 + $0x300] ss:$24 sps:$4 sm:$0xff]   ;;  %v4441_v3 = vld [vmem:[#allocation7 + $0x310] ss:$24 sps:$4 sm:$0xff]   ;;  %1149 = vmatprep.subr.bf16.mxu0 %v4438_v1  ;;  %v4442_v4 = vld [vmem:[#allocation7 + $0x334] ss:$24 sps:$4 sm:$0xff]  }
  0x96   : > { %1064 = vmatpush1.bf16.msra.mxu1 %v4440_v2  ;;  %1150 = vmatpush1.bf16.msra.mxu0 %v4441_v3  ;;  %v4444_v5 = vld [vmem:[#allocation7 + $0x344] ss:$24 sps:$4 sm:$0xff]   ;;  %v4446_v6 = vld [vmem:[#allocation7 + $0x330] ss:$24 sps:$4 sm:$0xff]   ;;  %v4447_v7 = vld [vmem:[#allocation7 + $0x340] ss:$24 sps:$4 sm:$0xff]  }
  0x97   : > { %1065 = vmatprep.subr.bf16.mxu1 %v4442_v4  ;;  %1151 = vmatprep.subr.bf16.mxu0 %v4444_v5  ;;  %v4448_v8 = vld [vmem:[#allocation7 + $0x364] ss:$24 sps:$4 sm:$0xff]   ;;  %v4450_v9 = vld [vmem:[#allocation7 + $0x374] ss:$24 sps:$4 sm:$0xff]   ;;  %v4452_v10 = vld [vmem:[#allocation7 + $0x360] ss:$24 sps:$4 sm:$0xff]  }
  0x98   : > { %v4453_v11 = vld [vmem:[#allocation7 + $0x370] ss:$24 sps:$4 sm:$0xff]   ;;  %v4454_v12 = vld [vmem:[#allocation7 + $0x394] ss:$24 sps:$4 sm:$0xff]   ;;  %v4456_v13 = vld [vmem:[#allocation7 + $0x3a4] ss:$24 sps:$4 sm:$0xff]  }
  0x99   : > { %v4458_v14 = vld [vmem:[#allocation7 + $0x390] ss:$24 sps:$4 sm:$0xff]   ;;  %v4459_v15 = vld [vmem:[#allocation7 + $0x3a0] ss:$24 sps:$4 sm:$0xff]   ;;  %v4460_v16 = vld [vmem:[#allocation7 + $0x3c4] ss:$24 sps:$4 sm:$0xff]  }
  0x9a   : > { %1066 = vmatpush1.bf16.msra.mxu1 %v4446_v6  ;;  %1152 = vmatpush1.bf16.msra.mxu0 %v4447_v7  ;;  %v4462_v17 = vld [vmem:[#allocation7 + $0x3d4] ss:$24 sps:$4 sm:$0xff]   ;;  %v4464_v18 = vld [vmem:[#allocation7 + $0x3c0] ss:$24 sps:$4 sm:$0xff]   ;;  %v4465_v19 = vld [vmem:[#allocation7 + $0x3d0] ss:$24 sps:$4 sm:$0xff]  }
  0x9b   : > { %1067 = vmatprep.subr.bf16.mxu1 %v4448_v8  ;;  %1153 = vmatprep.subr.bf16.mxu0 %v4450_v9  ;;  %v4466_v20 = vld [vmem:[#allocation7 + $0x3f4] ss:$24 sps:$4 sm:$0xff]   ;;  %v4468_v21 = vld [vmem:[#allocation7 + $0x404] ss:$24 sps:$4 sm:$0xff]   ;;  %v4470_v22 = vld [vmem:[#allocation7 + $0x3f0] ss:$24 sps:$4 sm:$0xff]  }
  0x9c   : > { %v4471_v23 = vld [vmem:[#allocation7 + $0x400] ss:$24 sps:$4 sm:$0xff]   ;;  %v4472_v24 = vld [vmem:[#allocation7 + $0x424] ss:$24 sps:$4 sm:$0xff]   ;;  %v4474_v25 = vld [vmem:[#allocation7 + $0x434] ss:$24 sps:$4 sm:$0xff]  }
  0x9d   : > { %v4476_v26 = vld [vmem:[#allocation7 + $0x420] ss:$24 sps:$4 sm:$0xff]   ;;  %v4477_v27 = vld [vmem:[#allocation7 + $0x430] ss:$24 sps:$4 sm:$0xff]   ;;  %v4478_v28 = vld [vmem:[#allocation7 + $0x454] ss:$24 sps:$4 sm:$0xff]  }
  0x9e   : > { %1068 = vmatpush1.bf16.msra.mxu1 %v4452_v10  ;;  %1154 = vmatpush1.bf16.msra.mxu0 %v4453_v11  ;;  %v4480_v29 = vld [vmem:[#allocation7 + $0x464] ss:$24 sps:$4 sm:$0xff]   ;;  %v4482_v30 = vld [vmem:[#allocation7 + $0x450] ss:$24 sps:$4 sm:$0xff]   ;;  %v4483_v31 = vld [vmem:[#allocation7 + $0x460] ss:$24 sps:$4 sm:$0xff]  }
  0x9f   : > { %1069 = vmatprep.subr.bf16.mxu1 %v4454_v12  ;;  %1155 = vmatprep.subr.bf16.mxu0 %v4456_v13  ;;  %v4484_v32 = vld [vmem:[#allocation7 + $0x484] ss:$24 sps:$4 sm:$0xff]   ;;  %v4486_v33 = vld [vmem:[#allocation7 + $0x494] ss:$24 sps:$4 sm:$0xff]   ;;  %v4488_v34 = vld [vmem:[#allocation7 + $0x480] ss:$24 sps:$4 sm:$0xff]  }
  0xa0   : > { %v4489_v35 = vld [vmem:[#allocation7 + $0x490] ss:$24 sps:$4 sm:$0xff]   ;;  %v4490_v36 = vld [vmem:[#allocation7 + $0x4b4] ss:$24 sps:$4 sm:$0xff]   ;;  %v4492_v37 = vld [vmem:[#allocation7 + $0x4c4] ss:$24 sps:$4 sm:$0xff]  }
  0xa1   : > { %v4494_v38 = vld [vmem:[#allocation7 + $0x4b0] ss:$24 sps:$4 sm:$0xff]   ;;  %v4495_v39 = vld [vmem:[#allocation7 + $0x4c0] ss:$24 sps:$4 sm:$0xff]   ;;  %v4496_v40 = vld [vmem:[#allocation7 + $0x4e4] ss:$24 sps:$4 sm:$0xff]  }
  0xa2   : > { %1070 = vmatpush1.bf16.msra.mxu1 %v4458_v14  ;;  %1156 = vmatpush1.bf16.msra.mxu0 %v4459_v15  ;;  %v4498_v41 = vld [vmem:[#allocation7 + $0x4f4] ss:$24 sps:$4 sm:$0xff]   ;;  %v4500_v42 = vld [vmem:[#allocation7 + $0x4e0] ss:$24 sps:$4 sm:$0xff]   ;;  %v4501_v43 = vld [vmem:[#allocation7 + $0x4f0] ss:$24 sps:$4 sm:$0xff]  }
  0xa3   : > { %1071 = vmatprep.subr.bf16.mxu1 %v4460_v16  ;;  %1157 = vmatprep.subr.bf16.mxu0 %v4462_v17  ;;  %v4502_v44 = vld [vmem:[#allocation7 + $0x514] ss:$24 sps:$4 sm:$0xff]   ;;  %v4504_v45 = vld [vmem:[#allocation7 + $0x524] ss:$24 sps:$4 sm:$0xff]   ;;  %v4506_v46 = vld [vmem:[#allocation7 + $0x510] ss:$24 sps:$4 sm:$0xff]  }
  0xa4   : > { %v5493_v47 = vld [vmem:[%s5470_s7 + $0x8] sm:$0xff]  ;;  %v5496_v48 = vld [vmem:[%s5470_s7 + $0x18] sm:$0xff]  ;;  %v5502_v53 = vld [vmem:[%s5470_s7] sm:$0xff]  ;;  %vm556_vm0 = vsmask.f32 7424  ;;  %vm1909_vm1 = vcmask 1046528  }
  0xa5   : > { %341 = vst [vmem:[#allocation2 + $0x8] sm:$0xff] %v5493_v47  ;;  %v345_v49 = vld [vmem:[%s5478_s24 + $0x8] sm:$0xff]  ;;  %343 = vst [vmem:[#allocation2 + $0x18] sm:$0xff] %v5496_v48  ;;  %v5505_v54 = vld [vmem:[%s5470_s7 + $0x10] sm:$0xff]  ;;  %vm2643_vm2 = vsmask.f32 6400 }
  0xa6   : > { %1072 = vmatpush1.bf16.msra.mxu1 %v4464_v18  ;;  %1158 = vmatpush1.bf16.msra.mxu0 %v4465_v19  ;;  %v4507_v50 = vld [vmem:[#allocation7 + $0x520] ss:$24 sps:$4 sm:$0xff]   ;;  %v4508_v51 = vld [vmem:[#allocation7 + $0x544] ss:$24 sps:$4 sm:$0xff]   ;;  %347 = vst [vmem:[#allocation2 + $0x28] sm:$0xff] %v345_v49  ;;  %340 = vst [vmem:[#allocation2] sm:$0xff] %v5502_v53 }
  0xa7   : > { %1073 = vmatprep.subr.bf16.mxu1 %v4466_v20  ;;  %1159 = vmatprep.subr.bf16.mxu0 %v4468_v21  ;;  %v4510_v52 = vld [vmem:[#allocation7 + $0x554] ss:$24 sps:$4 sm:$0xff]   ;;  %342 = vst [vmem:[#allocation2 + $0x10] sm:$0xff] %v5505_v54  ;;  %v4512_v56 = vld [vmem:[#allocation7 + $0x540] ss:$24 sps:$4 sm:$0xff]   ;;  %vm5246_vm15 = vmmov 0  }
  0xa8   : > { %v344_v55 = vld [vmem:[%s5478_s24] sm:$0xff]  ;;  %p327_p4 = scmp.lt.s32.totalorder %s5225_s18, 1 }
  0xa9   : > { %v4513_v57 = vld [vmem:[#allocation7 + $0x550] ss:$24 sps:$4 sm:$0xff]   ;;  %346 = vst [vmem:[#allocation2 + $0x20] sm:$0xff] %v344_v55  ;;  %v4514_v58 = vld [vmem:[#allocation7 + $0x574] ss:$24 sps:$4 sm:$0xff]  }
  0xaa   : > { %1074 = vmatpush1.bf16.msra.mxu1 %v4470_v22  ;;  %1160 = vmatpush1.bf16.msra.mxu0 %v4471_v23  ;;  %v4516_v59 = vld [vmem:[#allocation7 + $0x584] ss:$24 sps:$4 sm:$0xff]   ;;  %v4518_v61 = vld [vmem:[#allocation7 + $0x570] ss:$24 sps:$4 sm:$0xff]   ;;  %v4519_v62 = vld [vmem:[#allocation7 + $0x580] ss:$24 sps:$4 sm:$0xff]  }
  0xab   : > { %1075 = vmatprep.subr.bf16.mxu1 %v4472_v24  ;;  %1161 = vmatprep.subr.bf16.mxu0 %v4474_v25  ;;  %v4520_v1 = vld [vmem:[#allocation7 + $0x5a4] ss:$24 sps:$4 sm:$0xff]   ;;  %v4522_v3 = vld [vmem:[#allocation7 + $0x5b4] ss:$24 sps:$4 sm:$0xff]   ;;  %v4524_v8 = vld [vmem:[#allocation7 + $0x5a0] ss:$24 sps:$4 sm:$0xff]  }
  0xac   : > { %v451_v60 = vld [vmem:[#allocation2 + $0x8] sm:$0xfe]  ;;  %v4525_v12 = vld [vmem:[#allocation7 + $0x5b0] ss:$24 sps:$4 sm:$0xff]   ;;  %v4526_v13 = vld [vmem:[#allocation7 + $0x5d4] ss:$24 sps:$4 sm:$0xff]  }
  0xad   : > { %v455_v63 = vld [vmem:[#allocation2 + $0x28] sm:$0x1]  ;;  %v457_v0 = vpack.c.bf16 %v5496_v48, %v451_v60  ;;  %v450_v7 = vld [vmem:[#allocation2] sm:$0xfe]  ;;  %v4528_v16 = vld [vmem:[#allocation7 + $0x5e4] ss:$24 sps:$4 sm:$0xff]  }
  0xae   : > { %1076 = vmatpush1.bf16.msra.mxu1 %v4476_v26  ;;  %1162 = vmatpush1.bf16.msra.mxu0 %v4477_v27  ;;  %v459_v2 = vpack.c.bf16 %v455_v63, %v455_v63  ;;  %v456_v11 = vpack.c.bf16 %v5505_v54, %v450_v7  ;;  %v4530_v23 = vld [vmem:[#allocation7 + $0x5d0] ss:$24 sps:$4 sm:$0xff]   ;;  %v4531_v24 = vld [vmem:[#allocation7 + $0x5e0] ss:$24 sps:$4 sm:$0xff]   ;;  %v4534_v26 = vld [vmem:[#allocation7 + $0x30c] ss:$24 sps:$4 sm:$0xff]  }
  0xaf   : > { %1077 = vmatprep.subr.bf16.mxu1 %v4478_v28  ;;  %1163 = vmatprep.subr.bf16.mxu0 %v4480_v29  ;;  %v570_v4 = vshrl.u32 %v457_v0, 16  ;;  %v572_v5 = vshll.u32 %v457_v0, 16  ;;  %v4537_v27 = vld [vmem:[#allocation7 + $0x4] ss:$24 sps:$4 sm:$0xff]   ;;  %v4532_v29 = vld [vmem:[#allocation7 + $0x308] ss:$24 sps:$4 sm:$0xff]  }
  0xb0   : > { %v577_v6 = vshll.u32 %v459_v2, 16  ;;  %v454_v10 = vld [vmem:[#allocation2 + $0x20] sm:$0x1]  ;;  %v558_v18 = vshrl.u32 %v456_v11, 16  ;;  %v560_v19 = vshll.u32 %v456_v11, 16  ;;  %s5679_s18 = smov (!%p327_p4, %s5225_s18), 1 }
  0xb1   : > { %v574_v9 = vrot.slane %v572_v5, 1  ;;  %v458_v15 = vpack.c.bf16 %v454_v10, %v454_v10  ;;  %v4564_v49 = vld [vmem:[#allocation7 + $0x3fc] ss:$24 sps:$4 sm:$0xff]   ;;  %v4570_v55 = vld [vmem:[#allocation7 + $0x42c] ss:$24 sps:$4 sm:$0xff]   ;;  %s4258_s22 = sshll.u32 %s5679_s18, 7 }
  0xb2   : > { %1078 = vmatpush1.bf16.msra.mxu1 %v4482_v30  ;;  %1164 = vmatpush1.bf16.msra.mxu0 %v4483_v31  ;;  %v579_v14 = vrot.slane %v577_v6, 1  ;;  %v562_v22 = vrot.slane %v560_v19, 1  ;;  %v4535_v30 = vld [vmem:[#allocation7] ss:$24 sps:$4 sm:$0xff]   ;;  %v4579_v60 = vld [vmem:[#allocation7 + $0x154] ss:$24 sps:$4 sm:$0xff]   ;;  %s5596_s15 = scalar_lea.vmem %s5652_s4, %s4258_s22 }
  0xb3   : > { %1079 = vmatprep.subr.bf16.mxu1 %v4484_v32  ;;  %1165 = vmatprep.subr.bf16.mxu0 %v4486_v33  ;;  %v575_v17 = vor.u32 %v574_v9, %v570_v4  ;;  %v565_v20 = vshll.u32 %v458_v15, 16  ;;  %v4540_v32 = vld [vmem:[#allocation7 + $0x33c] ss:$24 sps:$4 sm:$0xff]   ;;  %v4582_v63 = vld [vmem:[#allocation7 + $0x48c] ss:$24 sps:$4 sm:$0xff]  }
  0xb4   : > { %v563_v28 = vor.u32 %v562_v22, %v558_v18  ;;  %v4543_v33 = vld [vmem:[#allocation7 + $0x34] ss:$24 sps:$4 sm:$0xff]   ;;  %v4585_v0 = vld [vmem:[#allocation7 + $0x184] ss:$24 sps:$4 sm:$0xff]   ;;  %v4583_v2 = vld [vmem:[#allocation7 + $0x180] ss:$24 sps:$4 sm:$0xff]  }
  0xb5   : > { %v580_v21 = vsel %vm556_vm0, %v575_v17, %v579_v14  ;;  %v567_v25 = vrot.slane %v565_v20, 1  ;;  %v4591_v4 = vld [vmem:[#allocation7 + $0x1b4] ss:$24 sps:$4 sm:$0xff]   ;;  %v4586_v5 = vld [vmem:[#allocation7 + $0x4b8] ss:$24 sps:$4 sm:$0xff]  }
  0xb6   : > { %1080 = vmatpush1.bf16.msra.mxu1 %v4488_v34  ;;  %1166 = vmatpush1.bf16.msra.mxu0 %v4489_v35  ;;  %v5518_v34 = vpack.c.bf16 %v5496_v48, %v5493_v47  ;;  %v4538_v35 = vld [vmem:[#allocation7 + $0x338] ss:$24 sps:$4 sm:$0xff]   ;;  %v4556_v47 = vld [vmem:[#allocation7 + $0x3c8] ss:$24 sps:$4 sm:$0xff]   ;;  %v4594_v7 = vld [vmem:[#allocation7 + $0x4ec] ss:$24 sps:$4 sm:$0xff]  }
  0xb7   : > { %1081 = vmatprep.subr.bf16.mxu1 %v4490_v36  ;;  %1167 = vmatprep.subr.bf16.mxu0 %v4492_v37  ;;  %v5514_v31 = vsel %vm556_vm0, %v563_v28, %v567_v25  ;;  %v4541_v36 = vld [vmem:[#allocation7 + $0x30] ss:$24 sps:$4 sm:$0xff]   ;;  %v4546_v37 = vld [vmem:[#allocation7 + $0x36c] ss:$24 sps:$4 sm:$0xff]   ;;  %v4559_v48 = vld [vmem:[#allocation7 + $0xc0] ss:$24 sps:$4 sm:$0xff]  }
  0xb8   : > { %1095 = vmatprep.mubr.bf16.mxu1 %v580_v21  ;;  %1181 = vmatprep.mubr.bf16.mxu0 %v580_v21  ;;  %v4589_v6 = vld [vmem:[#allocation7 + $0x1b0] ss:$24 sps:$4 sm:$0xff]   ;;  %v4595_v10 = vld [vmem:[#allocation7 + $0x1e0] ss:$24 sps:$4 sm:$0xff]   ;;  %v4600_v11 = vld [vmem:[#allocation7 + $0x51c] ss:$24 sps:$4 sm:$0xff]  }
  0xb9   : > { %v4592_v9 = vld [vmem:[#allocation7 + $0x4e8] ss:$24 sps:$4 sm:$0xff]   ;;  %v4606_v15 = vld [vmem:[#allocation7 + $0x54c] ss:$24 sps:$4 sm:$0xff]   ;;  %v4612_v19 = vld [vmem:[#allocation7 + $0x57c] ss:$24 sps:$4 sm:$0xff]  }
  0xba   : > { %1082 = vmatpush1.bf16.msra.mxu1 %v4494_v38  ;;  %1168 = vmatpush1.bf16.msra.mxu0 %v4495_v39  ;;  %v4549_v38 = vld [vmem:[#allocation7 + $0x64] ss:$24 sps:$4 sm:$0xff]   ;;  %v4544_v39 = vld [vmem:[#allocation7 + $0x368] ss:$24 sps:$4 sm:$0xff]   ;;  %v4615_v20 = vld [vmem:[#allocation7 + $0x274] ss:$24 sps:$4 sm:$0xff]  }
  0xbb   : > { %1083 = vmatprep.subr.bf16.mxu1 %v4496_v40  ;;  %1169 = vmatprep.subr.bf16.mxu0 %v4498_v41  ;;  %v4547_v40 = vld [vmem:[#allocation7 + $0x60] ss:$24 sps:$4 sm:$0xff]   ;;  %v4552_v41 = vld [vmem:[#allocation7 + $0x39c] ss:$24 sps:$4 sm:$0xff]   ;;  %v4601_v14 = vld [vmem:[#allocation7 + $0x210] ss:$24 sps:$4 sm:$0xff]  }
  0xbc   : > { %v4604_v17 = vld [vmem:[#allocation7 + $0x548] ss:$24 sps:$4 sm:$0xff]   ;;  %v4627_v28 = vld [vmem:[#allocation7 + $0x2d4] ss:$24 sps:$4 sm:$0xff]   ;;  %vm3676_vm0 = vcmask 130048  }
  0xbd   : > { %v4607_v18 = vld [vmem:[#allocation7 + $0x240] ss:$24 sps:$4 sm:$0xff]   ;;  %v4613_v22 = vld [vmem:[#allocation7 + $0x270] ss:$24 sps:$4 sm:$0xff]  }
  0xbe   : > { %1084 = vmatpush1.bf16.msra.mxu1 %v4500_v42  ;;  %1170 = vmatpush1.bf16.msra.mxu0 %v4501_v43  ;;  %v4555_v42 = vld [vmem:[#allocation7 + $0x94] ss:$24 sps:$4 sm:$0xff]   ;;  %v4550_v43 = vld [vmem:[#allocation7 + $0x398] ss:$24 sps:$4 sm:$0xff]   ;;  %v4616_v25 = vld [vmem:[#allocation7 + $0x5a8] ss:$24 sps:$4 sm:$0xff]  }
  0xbf   : > { %1085 = vmatprep.subr.bf16.mxu1 %v4502_v44  ;;  %1171 = vmatprep.subr.bf16.mxu0 %v4504_v45  ;;  %v4553_v44 = vld [vmem:[#allocation7 + $0x90] ss:$24 sps:$4 sm:$0xff]   ;;  %v4558_v45 = vld [vmem:[#allocation7 + $0x3cc] ss:$24 sps:$4 sm:$0xff]  }
  0xc2   : > { %1086 = vmatpush1.bf16.msra.mxu1 %v4506_v46  ;;  %1172 = vmatpush1.bf16.msra.mxu0 %v4507_v50  ;;  %v4561_v46 = vld [vmem:[#allocation7 + $0xc4] ss:$24 sps:$4 sm:$0xff]   ;;  %v4567_v50 = vld [vmem:[#allocation7 + $0xf4] ss:$24 sps:$4 sm:$0xff]  }
  0xc3   : > { %1087 = vmatprep.subr.bf16.mxu1 %v4508_v51  ;;  %1173 = vmatprep.subr.bf16.mxu0 %v4510_v52  ;;  %v4562_v51 = vld [vmem:[#allocation7 + $0x3f8] ss:$24 sps:$4 sm:$0xff]  }
  0xc4   : > { %v4565_v52 = vld [vmem:[#allocation7 + $0xf0] ss:$24 sps:$4 sm:$0xff]  }
  0xc6   : > { %1088 = vmatpush1.bf16.msra.mxu1 %v4512_v56  ;;  %1174 = vmatpush1.bf16.msra.mxu0 %v4513_v57  ;;  %v4573_v56 = vld [vmem:[#allocation7 + $0x124] ss:$24 sps:$4 sm:$0xff]   ;;  %v4568_v57 = vld [vmem:[#allocation7 + $0x428] ss:$24 sps:$4 sm:$0xff]  }
  0xc7   : > { %1089 = vmatprep.subr.bf16.mxu1 %v4514_v58  ;;  %1175 = vmatprep.subr.bf16.mxu0 %v4516_v59  ;;  %v4571_v58 = vld [vmem:[#allocation7 + $0x120] ss:$24 sps:$4 sm:$0xff]   ;;  %v4576_v59 = vld [vmem:[#allocation7 + $0x45c] ss:$24 sps:$4 sm:$0xff]  }
  0xca   : > { %1090 = vmatpush1.bf16.msra.mxu1 %v4518_v61  ;;  %1176 = vmatpush1.bf16.msra.mxu0 %v4519_v62  ;;  %v4574_v61 = vld [vmem:[#allocation7 + $0x458] ss:$24 sps:$4 sm:$0xff]  }
  0xcb   : > { %1091 = vmatprep.subr.bf16.mxu1 %v4520_v1  ;;  %1177 = vmatprep.subr.bf16.mxu0 %v4522_v3  ;;  %v4577_v62 = vld [vmem:[#allocation7 + $0x150] ss:$24 sps:$4 sm:$0xff]   ;;  %v4588_v3 = vld [vmem:[#allocation7 + $0x4bc] ss:$24 sps:$4 sm:$0xff]  }
  0xcc   : > { %v4580_v1 = vld [vmem:[#allocation7 + $0x488] ss:$24 sps:$4 sm:$0xff]  }
  0xce   : > { %1092 = vmatpush1.bf16.msra.mxu1 %v4524_v8  ;;  %1178 = vmatpush1.bf16.msra.mxu0 %v4525_v12  ;;  %v4597_v8 = vld [vmem:[#allocation7 + $0x1e4] ss:$24 sps:$4 sm:$0xff]   ;;  %v4603_v12 = vld [vmem:[#allocation7 + $0x214] ss:$24 sps:$4 sm:$0xff]  }
  0xcf   : > { %1093 = vmatprep.subr.bf16.mxu1 %v4526_v13  ;;  %1179 = vmatprep.subr.bf16.mxu0 %v4528_v16  ;;  %v4598_v13 = vld [vmem:[#allocation7 + $0x518] ss:$24 sps:$4 sm:$0xff]   ;;  %v4609_v16 = vld [vmem:[#allocation7 + $0x244] ss:$24 sps:$4 sm:$0xff]  }
  0xd2   : > { %1094 = vmatpush1.bf16.msra.mxu1 %v4530_v23  ;;  %1180 = vmatpush1.bf16.msra.mxu0 %v4531_v24  ;;  %v4618_v23 = vld [vmem:[#allocation7 + $0x5ac] ss:$24 sps:$4 sm:$0xff]  }
  0xd3   : > { %1106 = vmatprep.subr.bf16.mxu1 %v4534_v26  ;;  %1672 = vmatprep.subr.bf16.mxu0 %v4537_v27  ;;  %v4621_v24 = vld [vmem:[#allocation7 + $0x2a4] ss:$24 sps:$4 sm:$0xff]   ;;  %v4619_v26 = vld [vmem:[#allocation7 + $0x2a0] ss:$24 sps:$4 sm:$0xff]  }
  0xd4   : > { %v4624_v27 = vld [vmem:[#allocation7 + $0x5dc] ss:$24 sps:$4 sm:$0xff]  }
  0xd5   : > { %1096 = vmatmul.mubr.bf16.vlgmr.msra.gmra.mrb[0].mxu1 %v5514_v31  ;;  %1182 = vmatmul.mubr.bf16.vlgmr.msra.gmra.mrb[0].mxu0 %v5514_v31 }
  0xd6   : > { %1107 = vmatpush1.bf16.msra.mxu1 %v4532_v29  ;;  %1673 = vmatpush1.bf16.msra.mxu0 %v4535_v30  ;;  %v4622_v29 = vld [vmem:[#allocation7 + $0x5d8] ss:$24 sps:$4 sm:$0xff]  }
  0xd7   : > { %1108 = vmatprep.subr.bf16.mxu1 %v4540_v32  ;;  %1674 = vmatprep.subr.bf16.mxu0 %v4543_v33  ;;  %v4625_v30 = vld [vmem:[#allocation7 + $0x2d0] ss:$24 sps:$4 sm:$0xff]   ;;  %v4630_v32 = vld [vmem:[#allocation7 + $0xc] ss:$24 sps:$4 sm:$0xff]  }
  0xd8   : > { %1138 = vmatprep.mubr.bf16.mxu1 %v580_v21  ;;  %1704 = vmatprep.mubr.bf16.mxu0 %v5518_v34  ;;  %v4610_v21 = vld [vmem:[#allocation7 + $0x578] ss:$24 sps:$4 sm:$0xff]   ;;  %v4633_v33 = vld [vmem:[#allocation7 + $0x14] ss:$24 sps:$4 sm:$0xff]  }
  0xda   : > { %1109 = vmatpush1.bf16.msra.mxu1 %v4538_v35  ;;  %1675 = vmatpush1.bf16.msra.mxu0 %v4541_v36  ;;  %v5525_v35 = vpack.c.bf16 %v5505_v54, %v5502_v53  ;;  %v4628_v36 = vld [vmem:[#allocation7 + $0x8] ss:$24 sps:$4 sm:$0xff]   ;;  %v4642_v53 = vld [vmem:[#allocation7 + $0x6c] ss:$24 sps:$4 sm:$0xff]  }
  0xdb   : > { %1110 = vmatprep.subr.bf16.mxu1 %v4546_v37  ;;  %1676 = vmatprep.subr.bf16.mxu0 %v4549_v38  ;;  %v4631_v37 = vld [vmem:[#allocation7 + $0x10] ss:$24 sps:$4 sm:$0xff]   ;;  %v4636_v38 = vld [vmem:[#allocation7 + $0x3c] ss:$24 sps:$4 sm:$0xff]  }
  0xdc   : > { %v4645_v54 = vld [vmem:[#allocation7 + $0x74] ss:$24 sps:$4 sm:$0xff]  }
  0xde   : > { %1111 = vmatpush1.bf16.msra.mxu1 %v4544_v39  ;;  %1677 = vmatpush1.bf16.msra.mxu0 %v4547_v40  ;;  %v4639_v39 = vld [vmem:[#allocation7 + $0x44] ss:$24 sps:$4 sm:$0xff]   ;;  %v4634_v40 = vld [vmem:[#allocation7 + $0x38] ss:$24 sps:$4 sm:$0xff]  }
  0xdf   : > { %1112 = vmatprep.subr.bf16.mxu1 %v4552_v41  ;;  %1678 = vmatprep.subr.bf16.mxu0 %v4555_v42  ;;  %v4637_v41 = vld [vmem:[#allocation7 + $0x40] ss:$24 sps:$4 sm:$0xff]  }
  0xe0   : > { %v4640_v42 = vld [vmem:[#allocation7 + $0x68] ss:$24 sps:$4 sm:$0xff]  }
  0xe2   : > { %1113 = vmatpush1.bf16.msra.mxu1 %v4550_v43  ;;  %1679 = vmatpush1.bf16.msra.mxu0 %v4553_v44  ;;  %v4643_v43 = vld [vmem:[#allocation7 + $0x70] ss:$24 sps:$4 sm:$0xff]   ;;  %v4651_v44 = vld [vmem:[#allocation7 + $0xa4] ss:$24 sps:$4 sm:$0xff]  }
  0xe3   : > { %1114 = vmatprep.subr.bf16.mxu1 %v4558_v45  ;;  %1680 = vmatprep.subr.bf16.mxu0 %v4561_v46  ;;  %v4646_v45 = vld [vmem:[#allocation7 + $0x98] ss:$24 sps:$4 sm:$0xff]  }
  0xe4   : > { %v4649_v46 = vld [vmem:[#allocation7 + $0xa0] ss:$24 sps:$4 sm:$0xff]  }
  0xe6   : > { %1115 = vmatpush1.bf16.msra.mxu1 %v4556_v47  ;;  %1681 = vmatpush1.bf16.msra.mxu0 %v4559_v48  ;;  %v4654_v47 = vld [vmem:[#allocation7 + $0xcc] ss:$24 sps:$4 sm:$0xff]  }
  0xe7   : > { %1116 = vmatprep.subr.bf16.mxu1 %v4564_v49  ;;  %1682 = vmatprep.subr.bf16.mxu0 %v4567_v50  ;;  %v4657_v48 = vld [vmem:[#allocation7 + $0xd4] ss:$24 sps:$4 sm:$0xff]   ;;  %v4652_v49 = vld [vmem:[#allocation7 + $0xc8] ss:$24 sps:$4 sm:$0xff]  }
  0xe8   : > { %v4660_v50 = vld [vmem:[#allocation7 + $0xfc] ss:$24 sps:$4 sm:$0xff]  }
  0xea   : > { %1117 = vmatpush1.bf16.msra.mxu1 %v4562_v51  ;;  %1683 = vmatpush1.bf16.msra.mxu0 %v4565_v52  ;;  %v4663_v51 = vld [vmem:[#allocation7 + $0x104] ss:$24 sps:$4 sm:$0xff]   ;;  %v4658_v52 = vld [vmem:[#allocation7 + $0xf8] ss:$24 sps:$4 sm:$0xff]  }
  0xeb   : > { %1118 = vmatprep.subr.bf16.mxu1 %v4570_v55  ;;  %1684 = vmatprep.subr.bf16.mxu0 %v4573_v56  ;;  %v4661_v55 = vld [vmem:[#allocation7 + $0x100] ss:$24 sps:$4 sm:$0xff]   ;;  %v4666_v56 = vld [vmem:[#allocation7 + $0x12c] ss:$24 sps:$4 sm:$0xff]  }
  0xee   : > { %1119 = vmatpush1.bf16.msra.mxu1 %v4568_v57  ;;  %1685 = vmatpush1.bf16.msra.mxu0 %v4571_v58  ;;  %v4669_v57 = vld [vmem:[#allocation7 + $0x134] ss:$24 sps:$4 sm:$0xff]   ;;  %v4664_v58 = vld [vmem:[#allocation7 + $0x128] ss:$24 sps:$4 sm:$0xff]  }
  0xef   : > { %1120 = vmatprep.subr.bf16.mxu1 %v4576_v59  ;;  %1686 = vmatprep.subr.bf16.mxu0 %v4579_v60  ;;  %v4667_v59 = vld [vmem:[#allocation7 + $0x130] ss:$24 sps:$4 sm:$0xff]   ;;  %v4672_v60 = vld [vmem:[#allocation7 + $0x15c] ss:$24 sps:$4 sm:$0xff]  }
  0xf2   : > { %1121 = vmatpush1.bf16.msra.mxu1 %v4574_v61  ;;  %1687 = vmatpush1.bf16.msra.mxu0 %v4577_v62  ;;  %v4675_v61 = vld [vmem:[#allocation7 + $0x164] ss:$24 sps:$4 sm:$0xff]   ;;  %v4670_v62 = vld [vmem:[#allocation7 + $0x158] ss:$24 sps:$4 sm:$0xff]  }
  0xf3   : > { %1122 = vmatprep.subr.bf16.mxu1 %v4582_v63  ;;  %1688 = vmatprep.subr.bf16.mxu0 %v4585_v0  ;;  %v4673_v63 = vld [vmem:[#allocation7 + $0x160] ss:$24 sps:$4 sm:$0xff]   ;;  %v4678_v0 = vld [vmem:[#allocation7 + $0x18c] ss:$24 sps:$4 sm:$0xff]  }
  0xf6   : > { %1123 = vmatpush1.bf16.msra.mxu1 %v4580_v1  ;;  %1689 = vmatpush1.bf16.msra.mxu0 %v4583_v2  ;;  %v4681_v1 = vld [vmem:[#allocation7 + $0x194] ss:$24 sps:$4 sm:$0xff]   ;;  %v4676_v2 = vld [vmem:[#allocation7 + $0x188] ss:$24 sps:$4 sm:$0xff]  }
  0xf7   : > { %1124 = vmatprep.subr.bf16.mxu1 %v4588_v3  ;;  %1690 = vmatprep.subr.bf16.mxu0 %v4591_v4  ;;  %v4679_v3 = vld [vmem:[#allocation7 + $0x190] ss:$24 sps:$4 sm:$0xff]   ;;  %v4684_v4 = vld [vmem:[#allocation7 + $0x1bc] ss:$24 sps:$4 sm:$0xff]  }
  0xfa   : > { %1125 = vmatpush1.bf16.msra.mxu1 %v4586_v5  ;;  %1691 = vmatpush1.bf16.msra.mxu0 %v4589_v6  ;;  %v4687_v5 = vld [vmem:[#allocation7 + $0x1c4] ss:$24 sps:$4 sm:$0xff]   ;;  %v4682_v6 = vld [vmem:[#allocation7 + $0x1b8] ss:$24 sps:$4 sm:$0xff]  }
  0xfb   : > { %1126 = vmatprep.subr.bf16.mxu1 %v4594_v7  ;;  %1692 = vmatprep.subr.bf16.mxu0 %v4597_v8  ;;  %v4685_v7 = vld [vmem:[#allocation7 + $0x1c0] ss:$24 sps:$4 sm:$0xff]   ;;  %v4690_v8 = vld [vmem:[#allocation7 + $0x1ec] ss:$24 sps:$4 sm:$0xff]  }
  0xfe   : > { %1127 = vmatpush1.bf16.msra.mxu1 %v4592_v9  ;;  %1693 = vmatpush1.bf16.msra.mxu0 %v4595_v10  ;;  %v4693_v9 = vld [vmem:[#allocation7 + $0x1f4] ss:$24 sps:$4 sm:$0xff]   ;;  %v4688_v10 = vld [vmem:[#allocation7 + $0x1e8] ss:$24 sps:$4 sm:$0xff]  }
  0xff   : > { %1128 = vmatprep.subr.bf16.mxu1 %v4600_v11  ;;  %1694 = vmatprep.subr.bf16.mxu0 %v4603_v12  ;;  %v4691_v11 = vld [vmem:[#allocation7 + $0x1f0] ss:$24 sps:$4 sm:$0xff]   ;;  %v4696_v12 = vld [vmem:[#allocation7 + $0x21c] ss:$24 sps:$4 sm:$0xff]  }
 0x102   : > { %1129 = vmatpush1.bf16.msra.mxu1 %v4598_v13  ;;  %1695 = vmatpush1.bf16.msra.mxu0 %v4601_v14  ;;  %v4699_v13 = vld [vmem:[#allocation7 + $0x224] ss:$24 sps:$4 sm:$0xff]   ;;  %v4694_v14 = vld [vmem:[#allocation7 + $0x218] ss:$24 sps:$4 sm:$0xff]  }
 0x103   : > { %1130 = vmatprep.subr.bf16.mxu1 %v4606_v15  ;;  %1696 = vmatprep.subr.bf16.mxu0 %v4609_v16  ;;  %v4697_v15 = vld [vmem:[#allocation7 + $0x220] ss:$24 sps:$4 sm:$0xff]   ;;  %v4702_v16 = vld [vmem:[#allocation7 + $0x24c] ss:$24 sps:$4 sm:$0xff]  }
 0x106   : > { %1131 = vmatpush1.bf16.msra.mxu1 %v4604_v17  ;;  %1697 = vmatpush1.bf16.msra.mxu0 %v4607_v18  ;;  %v4705_v17 = vld [vmem:[#allocation7 + $0x254] ss:$24 sps:$4 sm:$0xff]   ;;  %v4700_v18 = vld [vmem:[#allocation7 + $0x248] ss:$24 sps:$4 sm:$0xff]  }
 0x107   : > { %1132 = vmatprep.subr.bf16.mxu1 %v4612_v19  ;;  %1698 = vmatprep.subr.bf16.mxu0 %v4615_v20  ;;  %v4703_v19 = vld [vmem:[#allocation7 + $0x250] ss:$24 sps:$4 sm:$0xff]   ;;  %v4708_v20 = vld [vmem:[#allocation7 + $0x27c] ss:$24 sps:$4 sm:$0xff]  }
 0x10a   : > { %1133 = vmatpush1.bf16.msra.mxu1 %v4610_v21  ;;  %1699 = vmatpush1.bf16.msra.mxu0 %v4613_v22  ;;  %v4711_v21 = vld [vmem:[#allocation7 + $0x284] ss:$24 sps:$4 sm:$0xff]   ;;  %v4706_v22 = vld [vmem:[#allocation7 + $0x278] ss:$24 sps:$4 sm:$0xff]  }
 0x10b   : > { %1134 = vmatprep.subr.bf16.mxu1 %v4618_v23  ;;  %1700 = vmatprep.subr.bf16.mxu0 %v4621_v24  ;;  %v4709_v23 = vld [vmem:[#allocation7 + $0x280] ss:$24 sps:$4 sm:$0xff]   ;;  %v4714_v24 = vld [vmem:[#allocation7 + $0x2ac] ss:$24 sps:$4 sm:$0xff]  }
 0x10e   : > { %1135 = vmatpush1.bf16.msra.mxu1 %v4616_v25  ;;  %1701 = vmatpush1.bf16.msra.mxu0 %v4619_v26  ;;  %v4717_v25 = vld [vmem:[#allocation7 + $0x2b4] ss:$24 sps:$4 sm:$0xff]   ;;  %v4712_v26 = vld [vmem:[#allocation7 + $0x2a8] ss:$24 sps:$4 sm:$0xff]  }
 0x10f   : > { %1136 = vmatprep.subr.bf16.mxu1 %v4624_v27  ;;  %1702 = vmatprep.subr.bf16.mxu0 %v4627_v28  ;;  %v4715_v27 = vld [vmem:[#allocation7 + $0x2b0] ss:$24 sps:$4 sm:$0xff]   ;;  %v4720_v28 = vld [vmem:[#allocation7 + $0x2dc] ss:$24 sps:$4 sm:$0xff]  }
 0x112   : > { %1137 = vmatpush1.bf16.msra.mxu1 %v4622_v29  ;;  %1703 = vmatpush1.bf16.msra.mxu0 %v4625_v30  ;;  %v1802_v29 = vld [vmem:[#allocation2 + $0x8] sm:$0xfc]  ;;  %v1804_v30 = vld [vmem:[#allocation2 + $0x28] sm:$0x3] }
 0x113   : > { %1715 = vmatprep.subr.bf16.mxu1 %v4630_v32  ;;  %1758 = vmatprep.subr.bf16.mxu0 %v4633_v33  ;;  %v4723_v32 = vld [vmem:[#allocation7 + $0x2e4] ss:$24 sps:$4 sm:$0xff]   ;;  %v4718_v33 = vld [vmem:[#allocation7 + $0x2d8] ss:$24 sps:$4 sm:$0xff]  }
 0x115   : > { %1139 = vmatmul.mubr.bf16.vlgmr.msra.gmra.mrb[4].mxu1 %v5514_v31  ;;  %1705 = vmatmul.mubr.bf16.vlgmr.msra.gmra.mrb[4].mxu0 %v5525_v35  ;;  %v4648_v31 = vld [vmem:[#allocation7 + $0x9c] ss:$24 sps:$4 sm:$0xff]  }
 0x116   : > { %1716 = vmatpush1.bf16.msra.mxu1 %v4628_v36  ;;  %1759 = vmatpush1.bf16.msra.mxu0 %v4631_v37  ;;  %v5531_v36 = vld [vmem:[#allocation2 + $0x18] sm:$0xff] }
 0x117   : > { %1717 = vmatprep.subr.bf16.mxu1 %v4636_v38  ;;  %1760 = vmatprep.subr.bf16.mxu0 %v4639_v39  ;;  %v1806_v37 = vpack.c.bf16 %v5531_v36, %v1802_v29  ;;  %v1808_v38 = vpack.c.bf16 %v1804_v30, %v1804_v30  ;;  %v4721_v39 = vld [vmem:[#allocation7 + $0x2e0] ss:$24 sps:$4 sm:$0xff]   ;;  %v4804_v29 = vld [vmem:[#allocation7 + $0x874] ss:$24 sps:$4 sm:$0xff]  }
 0x118   : > { %1747 = vmatprep.mubr.bf16.mxu1 %v5518_v34  ;;  %1790 = vmatprep.mubr.bf16.mxu0 %v5518_v34  ;;  %v4655_v34 = vld [vmem:[#allocation7 + $0xd0] ss:$24 sps:$4 sm:$0xff]   ;;  %v4807_v30 = vld [vmem:[#allocation7 + $0x87c] ss:$24 sps:$4 sm:$0xff]  }
 0x11a   : > { %1718 = vmatpush1.bf16.msra.mxu1 %v4634_v40  ;;  %1761 = vmatpush1.bf16.msra.mxu0 %v4637_v41  ;;  %v4726_v40 = vld [vmem:[#allocation7 + $0x604] ss:$24 sps:$4 sm:$0xff]  }
 0x11b   : > { %1719 = vmatprep.subr.bf16.mxu1 %v4642_v53  ;;  %1762 = vmatprep.subr.bf16.mxu0 %v4645_v54  ;;  %v4729_v41 = vld [vmem:[#allocation7 + $0x60c] ss:$24 sps:$4 sm:$0xff]   ;;  %v4724_v53 = vld [vmem:[#allocation7 + $0x600] ss:$24 sps:$4 sm:$0xff]   ;;  %v1913_v54 = vrot.slane %v1806_v37, 1 }
 0x11c   : > { %v4805_v37 = vld [vmem:[#allocation7 + $0x878] ss:$24 sps:$4 sm:$0xff]  }
 0x11e   : > { %1720 = vmatpush1.bf16.msra.mxu1 %v4640_v42  ;;  %1763 = vmatpush1.bf16.msra.mxu0 %v4643_v43  ;;  %v1914_v42 = vrot.slane %v1808_v38, 1  ;;  %v4727_v43 = vld [vmem:[#allocation7 + $0x608] ss:$24 sps:$4 sm:$0xff]  }
 0x11f   : > { %1721 = vmatprep.subr.bf16.mxu1 %v4648_v31  ;;  %1764 = vmatprep.subr.bf16.mxu0 %v4651_v44  ;;  %v4732_v31 = vld [vmem:[#allocation7 + $0x634] ss:$24 sps:$4 sm:$0xff]  }
 0x120   : > { %v4735_v44 = vld [vmem:[#allocation7 + $0x63c] ss:$24 sps:$4 sm:$0xff]  }
 0x122   : > { %1722 = vmatpush1.bf16.msra.mxu1 %v4646_v45  ;;  %1765 = vmatpush1.bf16.msra.mxu0 %v4649_v46  ;;  %v4730_v45 = vld [vmem:[#allocation7 + $0x630] ss:$24 sps:$4 sm:$0xff]   ;;  %v5537_v46 = vsel %vm1909_vm1, %v1913_v54, %v1914_v42  ;;  %v4808_v42 = vld [vmem:[#allocation7 + $0x8a0] ss:$24 sps:$4 sm:$0xff]  }
 0x123   : > { %1723 = vmatprep.subr.bf16.mxu1 %v4654_v47  ;;  %1766 = vmatprep.subr.bf16.mxu0 %v4657_v48  ;;  %v4733_v47 = vld [vmem:[#allocation7 + $0x638] ss:$24 sps:$4 sm:$0xff]   ;;  %v4738_v48 = vld [vmem:[#allocation7 + $0x664] ss:$24 sps:$4 sm:$0xff]  }
 0x124   : > { %v1803_v54 = vld [vmem:[#allocation2 + $0x20] sm:$0x3] }
 0x126   : > { %1724 = vmatpush1.bf16.msra.mxu1 %v4652_v49  ;;  %1767 = vmatpush1.bf16.msra.mxu0 %v4655_v34  ;;  %v4741_v49 = vld [vmem:[#allocation7 + $0x66c] ss:$24 sps:$4 sm:$0xff]   ;;  %v4736_v34 = vld [vmem:[#allocation7 + $0x660] ss:$24 sps:$4 sm:$0xff]  }
 0x127   : > { %1725 = vmatprep.subr.bf16.mxu1 %v4660_v50  ;;  %1768 = vmatprep.subr.bf16.mxu0 %v4663_v51  ;;  %v4739_v50 = vld [vmem:[#allocation7 + $0x668] ss:$24 sps:$4 sm:$0xff]   ;;  %v4747_v51 = vld [vmem:[#allocation7 + $0x69c] ss:$24 sps:$4 sm:$0xff]  }
 0x12a   : > { %1726 = vmatpush1.bf16.msra.mxu1 %v4658_v52  ;;  %1769 = vmatpush1.bf16.msra.mxu0 %v4661_v55  ;;  %v4742_v52 = vld [vmem:[#allocation7 + $0x690] ss:$24 sps:$4 sm:$0xff]  }
 0x12b   : > { %1727 = vmatprep.subr.bf16.mxu1 %v4666_v56  ;;  %1770 = vmatprep.subr.bf16.mxu0 %v4669_v57  ;;  %v4745_v55 = vld [vmem:[#allocation7 + $0x698] ss:$24 sps:$4 sm:$0xff]   ;;  %v4750_v56 = vld [vmem:[#allocation7 + $0x6c4] ss:$24 sps:$4 sm:$0xff]  }
 0x12c   : > { %v4753_v57 = vld [vmem:[#allocation7 + $0x6cc] ss:$24 sps:$4 sm:$0xff]  }
 0x12e   : > { %1728 = vmatpush1.bf16.msra.mxu1 %v4664_v58  ;;  %1771 = vmatpush1.bf16.msra.mxu0 %v4667_v59  ;;  %v4748_v58 = vld [vmem:[#allocation7 + $0x6c0] ss:$24 sps:$4 sm:$0xff]  }
 0x12f   : > { %1729 = vmatprep.subr.bf16.mxu1 %v4672_v60  ;;  %1772 = vmatprep.subr.bf16.mxu0 %v4675_v61  ;;  %v4751_v59 = vld [vmem:[#allocation7 + $0x6c8] ss:$24 sps:$4 sm:$0xff]   ;;  %v4756_v60 = vld [vmem:[#allocation7 + $0x6f4] ss:$24 sps:$4 sm:$0xff]  }
 0x130   : > { %v4759_v61 = vld [vmem:[#allocation7 + $0x6fc] ss:$24 sps:$4 sm:$0xff]  }
 0x132   : > { %1730 = vmatpush1.bf16.msra.mxu1 %v4670_v62  ;;  %1773 = vmatpush1.bf16.msra.mxu0 %v4673_v63  ;;  %v4754_v62 = vld [vmem:[#allocation7 + $0x6f0] ss:$24 sps:$4 sm:$0xff]  }
 0x133   : > { %1731 = vmatprep.subr.bf16.mxu1 %v4678_v0  ;;  %1774 = vmatprep.subr.bf16.mxu0 %v4681_v1  ;;  %v4757_v63 = vld [vmem:[#allocation7 + $0x6f8] ss:$24 sps:$4 sm:$0xff]   ;;  %v4762_v0 = vld [vmem:[#allocation7 + $0x724] ss:$24 sps:$4 sm:$0xff]  }
 0x134   : > { %v4765_v1 = vld [vmem:[#allocation7 + $0x72c] ss:$24 sps:$4 sm:$0xff]  }
 0x136   : > { %1732 = vmatpush1.bf16.msra.mxu1 %v4676_v2  ;;  %1775 = vmatpush1.bf16.msra.mxu0 %v4679_v3  ;;  %v4760_v2 = vld [vmem:[#allocation7 + $0x720] ss:$24 sps:$4 sm:$0xff]  }
 0x137   : > { %1733 = vmatprep.subr.bf16.mxu1 %v4684_v4  ;;  %1776 = vmatprep.subr.bf16.mxu0 %v4687_v5  ;;  %v4763_v3 = vld [vmem:[#allocation7 + $0x728] ss:$24 sps:$4 sm:$0xff]   ;;  %v4768_v4 = vld [vmem:[#allocation7 + $0x754] ss:$24 sps:$4 sm:$0xff]  }
 0x138   : > { %v4771_v5 = vld [vmem:[#allocation7 + $0x75c] ss:$24 sps:$4 sm:$0xff]  }
 0x13a   : > { %1734 = vmatpush1.bf16.msra.mxu1 %v4682_v6  ;;  %1777 = vmatpush1.bf16.msra.mxu0 %v4685_v7  ;;  %v4766_v6 = vld [vmem:[#allocation7 + $0x750] ss:$24 sps:$4 sm:$0xff]  }
 0x13b   : > { %1735 = vmatprep.subr.bf16.mxu1 %v4690_v8  ;;  %1778 = vmatprep.subr.bf16.mxu0 %v4693_v9  ;;  %v4769_v7 = vld [vmem:[#allocation7 + $0x758] ss:$24 sps:$4 sm:$0xff]   ;;  %v4774_v8 = vld [vmem:[#allocation7 + $0x784] ss:$24 sps:$4 sm:$0xff]  }
 0x13c   : > { %v4777_v9 = vld [vmem:[#allocation7 + $0x78c] ss:$24 sps:$4 sm:$0xff]  }
 0x13e   : > { %1736 = vmatpush1.bf16.msra.mxu1 %v4688_v10  ;;  %1779 = vmatpush1.bf16.msra.mxu0 %v4691_v11  ;;  %v4772_v10 = vld [vmem:[#allocation7 + $0x780] ss:$24 sps:$4 sm:$0xff]  }
 0x13f   : > { %1737 = vmatprep.subr.bf16.mxu1 %v4696_v12  ;;  %1780 = vmatprep.subr.bf16.mxu0 %v4699_v13  ;;  %v4775_v11 = vld [vmem:[#allocation7 + $0x788] ss:$24 sps:$4 sm:$0xff]   ;;  %v4780_v12 = vld [vmem:[#allocation7 + $0x7b4] ss:$24 sps:$4 sm:$0xff]  }
 0x140   : > { %v4783_v13 = vld [vmem:[#allocation7 + $0x7bc] ss:$24 sps:$4 sm:$0xff]  }
 0x142   : > { %1738 = vmatpush1.bf16.msra.mxu1 %v4694_v14  ;;  %1781 = vmatpush1.bf16.msra.mxu0 %v4697_v15  ;;  %v4778_v14 = vld [vmem:[#allocation7 + $0x7b0] ss:$24 sps:$4 sm:$0xff]  }
 0x143   : > { %1739 = vmatprep.subr.bf16.mxu1 %v4702_v16  ;;  %1782 = vmatprep.subr.bf16.mxu0 %v4705_v17  ;;  %v4781_v15 = vld [vmem:[#allocation7 + $0x7b8] ss:$24 sps:$4 sm:$0xff]   ;;  %v4786_v16 = vld [vmem:[#allocation7 + $0x7e4] ss:$24 sps:$4 sm:$0xff]  }
 0x144   : > { %v4789_v17 = vld [vmem:[#allocation7 + $0x7ec] ss:$24 sps:$4 sm:$0xff]  }
 0x146   : > { %1740 = vmatpush1.bf16.msra.mxu1 %v4700_v18  ;;  %1783 = vmatpush1.bf16.msra.mxu0 %v4703_v19  ;;  %v4784_v18 = vld [vmem:[#allocation7 + $0x7e0] ss:$24 sps:$4 sm:$0xff]  }
 0x147   : > { %1741 = vmatprep.subr.bf16.mxu1 %v4708_v20  ;;  %1784 = vmatprep.subr.bf16.mxu0 %v4711_v21  ;;  %v4787_v19 = vld [vmem:[#allocation7 + $0x7e8] ss:$24 sps:$4 sm:$0xff]   ;;  %v4792_v20 = vld [vmem:[#allocation7 + $0x814] ss:$24 sps:$4 sm:$0xff]  }
 0x148   : > { %v4795_v21 = vld [vmem:[#allocation7 + $0x81c] ss:$24 sps:$4 sm:$0xff]  }
 0x14a   : > { %1742 = vmatpush1.bf16.msra.mxu1 %v4706_v22  ;;  %1785 = vmatpush1.bf16.msra.mxu0 %v4709_v23  ;;  %v4790_v22 = vld [vmem:[#allocation7 + $0x810] ss:$24 sps:$4 sm:$0xff]  }
 0x14b   : > { %1743 = vmatprep.subr.bf16.mxu1 %v4714_v24  ;;  %1786 = vmatprep.subr.bf16.mxu0 %v4717_v25  ;;  %v4793_v23 = vld [vmem:[#allocation7 + $0x818] ss:$24 sps:$4 sm:$0xff]   ;;  %v4798_v24 = vld [vmem:[#allocation7 + $0x844] ss:$24 sps:$4 sm:$0xff]  }
 0x14c   : > { %v4801_v25 = vld [vmem:[#allocation7 + $0x84c] ss:$24 sps:$4 sm:$0xff]  }
 0x14e   : > { %1744 = vmatpush1.bf16.msra.mxu1 %v4712_v26  ;;  %1787 = vmatpush1.bf16.msra.mxu0 %v4715_v27  ;;  %v2540_v26 = vld [vmem:[#allocation2 + $0x8] sm:$0xf8] }
 0x14f   : > { %1745 = vmatprep.subr.bf16.mxu1 %v4720_v28  ;;  %1788 = vmatprep.subr.bf16.mxu0 %v4723_v32  ;;  %v4796_v27 = vld [vmem:[#allocation7 + $0x840] ss:$24 sps:$4 sm:$0xff]   ;;  %v2544_v38 = vpack.c.bf16 %v5531_v36, %v2540_v26 }
 0x150   : > { %v4799_v28 = vld [vmem:[#allocation7 + $0x848] ss:$24 sps:$4 sm:$0xff]   ;;  %v2542_v32 = vld [vmem:[#allocation2 + $0x28] sm:$0x7] }
 0x151   : > { %v5542_v36 = vld [vmem:[#allocation2 + $0x10] sm:$0xff] }
 0x152   : > { %1746 = vmatpush1.bf16.msra.mxu1 %v4718_v33  ;;  %1789 = vmatpush1.bf16.msra.mxu0 %v4721_v39  ;;  %v4802_v33 = vld [vmem:[#allocation7 + $0x870] ss:$24 sps:$4 sm:$0xff]   ;;  %v4810_v39 = vld [vmem:[#allocation7 + $0x8a4] ss:$24 sps:$4 sm:$0xff]  }
 0x153   : > { %2398 = vmatprep.subr.bf16.mxu0 %v4726_v40  ;;  %2441 = vmatprep.subr.bf16.mxu1 %v4729_v41  ;;  %v4813_v40 = vld [vmem:[#allocation7 + $0x8ac] ss:$24 sps:$4 sm:$0xff]   ;;  %v2546_v41 = vpack.c.bf16 %v2542_v32, %v2542_v32  ;;  %v4867_v32 = vld [vmem:[#allocation7 + $0xa5c] ss:$24 sps:$4 sm:$0xff]  }
 0x155   : > { %1748 = vmatmul.mubr.bf16.vlgmr.msra.gmra.mrb[4].mxu1 %v5525_v35  ;;  %1791 = vmatmul.mubr.bf16.vlgmr.msra.gmra.mrb[0].mxu0 %v5525_v35  ;;  %v4744_v35 = vld [vmem:[#allocation7 + $0x694] ss:$24 sps:$4 sm:$0xff]  }
 0x156   : > { %2399 = vmatpush1.bf16.msra.mxu0 %v4724_v53  ;;  %2442 = vmatpush1.bf16.msra.mxu1 %v4727_v43  ;;  %v1801_v53 = vld [vmem:[#allocation2] sm:$0xfc]  ;;  %v4811_v43 = vld [vmem:[#allocation7 + $0x8a8] ss:$24 sps:$4 sm:$0xff]  }
 0x157   : > { %2400 = vmatprep.subr.bf16.mxu0 %v4732_v31  ;;  %2443 = vmatprep.subr.bf16.mxu1 %v4735_v44  ;;  %v2662_v31 = vshrl.u32 %v2544_v38, 16  ;;  %v2665_v44 = vshll.u32 %v2544_v38, 16  ;;  %v4865_v38 = vld [vmem:[#allocation7 + $0xa58] ss:$24 sps:$4 sm:$0xff]  }
 0x158   : > { %2430 = vmatprep.mubr.bf16.mxu0 %v5537_v46  ;;  %2473 = vmatprep.mubr.bf16.mxu1 %v5537_v46 }
 0x15a   : > { %2401 = vmatpush1.bf16.msra.mxu0 %v4730_v45  ;;  %2444 = vmatpush1.bf16.msra.mxu1 %v4733_v47  ;;  %v2670_v45 = vshrl.u32 %v2546_v41, 16  ;;  %v2673_v47 = vshll.u32 %v2546_v41, 16  ;;  %v4868_v41 = vld [vmem:[#allocation7 + $0x790] ss:$24 sps:$4 sm:$0xff]  }
 0x15b   : > { %2402 = vmatprep.subr.bf16.mxu0 %v4738_v48  ;;  %2445 = vmatprep.subr.bf16.mxu1 %v4741_v49  ;;  %v4816_v48 = vld [vmem:[#allocation7 + $0x8d4] ss:$24 sps:$4 sm:$0xff]  }
 0x15c   : > { %v4819_v49 = vld [vmem:[#allocation7 + $0x8dc] ss:$24 sps:$4 sm:$0xff]  }
 0x15e   : > { %2403 = vmatpush1.bf16.msra.mxu0 %v4736_v34  ;;  %2446 = vmatpush1.bf16.msra.mxu1 %v4739_v50  ;;  %v1805_v34 = vpack.c.bf16 %v5542_v36, %v1801_v53  ;;  %v1807_v50 = vpack.c.bf16 %v1803_v54, %v1803_v54  ;;  %v4871_v53 = vld [vmem:[#allocation7 + $0xa88] ss:$24 sps:$4 sm:$0xff]   ;;  %v4876_v54 = vld [vmem:[#allocation7 + $0x7c4] ss:$24 sps:$4 sm:$0xff]  }
 0x15f   : > { %2404 = vmatprep.subr.bf16.mxu0 %v4744_v35  ;;  %2447 = vmatprep.subr.bf16.mxu1 %v4747_v51  ;;  %v4814_v35 = vld [vmem:[#allocation7 + $0x8d0] ss:$24 sps:$4 sm:$0xff]  }
 0x160   : > { %v4817_v51 = vld [vmem:[#allocation7 + $0x8d8] ss:$24 sps:$4 sm:$0xff]  }
 0x162   : > { %2405 = vmatpush1.bf16.msra.mxu0 %v4742_v52  ;;  %2448 = vmatpush1.bf16.msra.mxu1 %v4745_v55  ;;  %v2664_v52 = vrot.slane %v2662_v31, 1  ;;  %v4822_v55 = vld [vmem:[#allocation7 + $0x614] ss:$24 sps:$4 sm:$0xff]   ;;  %v4877_v31 = vld [vmem:[#allocation7 + $0xab8] ss:$24 sps:$4 sm:$0xff]  }
 0x163   : > { %2406 = vmatprep.subr.bf16.mxu0 %v4750_v56  ;;  %2449 = vmatprep.subr.bf16.mxu1 %v4753_v57  ;;  %v2667_v56 = vrot.slane %v2665_v44, 2  ;;  %v2672_v57 = vrot.slane %v2670_v45, 1  ;;  %v4882_v44 = vld [vmem:[#allocation7 + $0x7f4] ss:$24 sps:$4 sm:$0xff]  }
 0x164   : > { %v4885_v45 = vld [vmem:[#allocation7 + $0xaec] ss:$24 sps:$4 sm:$0xff]  }
 0x166   : > { %2407 = vmatpush1.bf16.msra.mxu0 %v4748_v58  ;;  %2450 = vmatpush1.bf16.msra.mxu1 %v4751_v59  ;;  %v2675_v58 = vrot.slane %v2673_v47, 2  ;;  %v4825_v59 = vld [vmem:[#allocation7 + $0x90c] ss:$24 sps:$4 sm:$0xff]   ;;  %v4880_v47 = vld [vmem:[#allocation7 + $0x7f0] ss:$24 sps:$4 sm:$0xff]  }
 0x167   : > { %2408 = vmatprep.subr.bf16.mxu0 %v4756_v60  ;;  %2451 = vmatprep.subr.bf16.mxu1 %v4759_v61  ;;  %v1910_v60 = vrot.slane %v1805_v34, 1  ;;  %v1911_v61 = vrot.slane %v1807_v50, 1  ;;  %v4891_v34 = vld [vmem:[#allocation7 + $0xb1c] ss:$24 sps:$4 sm:$0xff]   ;;  %v4886_v50 = vld [vmem:[#allocation7 + $0x820] ss:$24 sps:$4 sm:$0xff]  }
 0x16a   : > { %2409 = vmatpush1.bf16.msra.mxu0 %v4754_v62  ;;  %2452 = vmatpush1.bf16.msra.mxu1 %v4757_v63  ;;  %v4820_v62 = vld [vmem:[#allocation7 + $0x610] ss:$24 sps:$4 sm:$0xff]  }
 0x16b   : > { %2410 = vmatprep.subr.bf16.mxu0 %v4762_v0  ;;  %2453 = vmatprep.subr.bf16.mxu1 %v4765_v1  ;;  %v4823_v63 = vld [vmem:[#allocation7 + $0x908] ss:$24 sps:$4 sm:$0xff]   ;;  %v4828_v0 = vld [vmem:[#allocation7 + $0x644] ss:$24 sps:$4 sm:$0xff]   ;;  %v2668_v1 = vor.u32 %v2667_v56, %v2664_v52  ;;  %v2541_v56 = vld [vmem:[#allocation2 + $0x20] sm:$0x7] }
 0x16c   : > { %v4897_v52 = vld [vmem:[#allocation7 + $0xb4c] ss:$24 sps:$4 sm:$0xff]  }
 0x16e   : > { %2411 = vmatpush1.bf16.msra.mxu0 %v4760_v2  ;;  %2454 = vmatpush1.bf16.msra.mxu1 %v4763_v3  ;;  %v2676_v2 = vor.u32 %v2675_v58, %v2672_v57  ;;  %v5546_v3 = vsel %vm1909_vm1, %v1910_v60, %v1911_v61  ;;  %v4892_v57 = vld [vmem:[#allocation7 + $0x850] ss:$24 sps:$4 sm:$0xff]   ;;  %v2545_v60 = vpack.c.bf16 %v2541_v56, %v2541_v56  ;;  %v4900_v61 = vld [vmem:[#allocation7 + $0x884] ss:$24 sps:$4 sm:$0xff]  }
 0x16f   : > { %2412 = vmatprep.subr.bf16.mxu0 %v4768_v4  ;;  %2455 = vmatprep.subr.bf16.mxu1 %v4771_v5  ;;  %v4831_v4 = vld [vmem:[#allocation7 + $0x93c] ss:$24 sps:$4 sm:$0xff]   ;;  %v4826_v5 = vld [vmem:[#allocation7 + $0x640] ss:$24 sps:$4 sm:$0xff]   ;;  %v4961_v56 = vld [vmem:[#allocation7 + $0xbd0] ss:$24 sps:$4 sm:$0xff]  }
 0x170   : > { %v4895_v58 = vld [vmem:[#allocation7 + $0xb48] ss:$24 sps:$4 sm:$0xff]  }
 0x172   : > { %2413 = vmatpush1.bf16.msra.mxu0 %v4766_v6  ;;  %2456 = vmatpush1.bf16.msra.mxu1 %v4769_v7  ;;  %v4829_v6 = vld [vmem:[#allocation7 + $0x938] ss:$24 sps:$4 sm:$0xff]   ;;  %v5551_v7 = vsel %vm2643_vm2, %v2668_v1, %v2676_v2 }
 0x173   : > { %2414 = vmatprep.subr.bf16.mxu0 %v4774_v8  ;;  %2457 = vmatprep.subr.bf16.mxu1 %v4777_v9  ;;  %v4834_v8 = vld [vmem:[#allocation7 + $0x674] ss:$24 sps:$4 sm:$0xff]  }
 0x174   : > { %v4837_v9 = vld [vmem:[#allocation7 + $0x96c] ss:$24 sps:$4 sm:$0xff]  }
 0x176   : > { %2415 = vmatpush1.bf16.msra.mxu0 %v4772_v10  ;;  %2458 = vmatpush1.bf16.msra.mxu1 %v4775_v11  ;;  %v4832_v10 = vld [vmem:[#allocation7 + $0x670] ss:$24 sps:$4 sm:$0xff]  }
 0x177   : > { %2416 = vmatprep.subr.bf16.mxu0 %v4780_v12  ;;  %2459 = vmatprep.subr.bf16.mxu1 %v4783_v13  ;;  %v4835_v11 = vld [vmem:[#allocation7 + $0x968] ss:$24 sps:$4 sm:$0xff]   ;;  %v4840_v12 = vld [vmem:[#allocation7 + $0x6a4] ss:$24 sps:$4 sm:$0xff]  }
 0x178   : > { %v4843_v13 = vld [vmem:[#allocation7 + $0x99c] ss:$24 sps:$4 sm:$0xff]  }
 0x17a   : > { %2417 = vmatpush1.bf16.msra.mxu0 %v4778_v14  ;;  %2460 = vmatpush1.bf16.msra.mxu1 %v4781_v15  ;;  %v4838_v14 = vld [vmem:[#allocation7 + $0x6a0] ss:$24 sps:$4 sm:$0xff]  }
 0x17b   : > { %2418 = vmatprep.subr.bf16.mxu0 %v4786_v16  ;;  %2461 = vmatprep.subr.bf16.mxu1 %v4789_v17  ;;  %v4841_v15 = vld [vmem:[#allocation7 + $0x998] ss:$24 sps:$4 sm:$0xff]   ;;  %v4846_v16 = vld [vmem:[#allocation7 + $0x6d4] ss:$24 sps:$4 sm:$0xff]  }
 0x17c   : > { %v4849_v17 = vld [vmem:[#allocation7 + $0x9cc] ss:$24 sps:$4 sm:$0xff]  }
 0x17e   : > { %2419 = vmatpush1.bf16.msra.mxu0 %v4784_v18  ;;  %2462 = vmatpush1.bf16.msra.mxu1 %v4787_v19  ;;  %v4844_v18 = vld [vmem:[#allocation7 + $0x6d0] ss:$24 sps:$4 sm:$0xff]  }
 0x17f   : > { %2420 = vmatprep.subr.bf16.mxu0 %v4792_v20  ;;  %2463 = vmatprep.subr.bf16.mxu1 %v4795_v21  ;;  %v4847_v19 = vld [vmem:[#allocation7 + $0x9c8] ss:$24 sps:$4 sm:$0xff]   ;;  %v4855_v20 = vld [vmem:[#allocation7 + $0x9fc] ss:$24 sps:$4 sm:$0xff]  }
 0x180   : > { %v4850_v21 = vld [vmem:[#allocation7 + $0x700] ss:$24 sps:$4 sm:$0xff]  }
 0x182   : > { %2421 = vmatpush1.bf16.msra.mxu0 %v4790_v22  ;;  %2464 = vmatpush1.bf16.msra.mxu1 %v4793_v23  ;;  %v4853_v22 = vld [vmem:[#allocation7 + $0x9f8] ss:$24 sps:$4 sm:$0xff]   ;;  %v4858_v23 = vld [vmem:[#allocation7 + $0x734] ss:$24 sps:$4 sm:$0xff]  }
 0x183   : > { %2422 = vmatprep.subr.bf16.mxu0 %v4798_v24  ;;  %2465 = vmatprep.subr.bf16.mxu1 %v4801_v25  ;;  %v4861_v24 = vld [vmem:[#allocation7 + $0xa2c] ss:$24 sps:$4 sm:$0xff]  }
 0x186   : > { %2423 = vmatpush1.bf16.msra.mxu0 %v4796_v27  ;;  %2466 = vmatpush1.bf16.msra.mxu1 %v4799_v28  ;;  %v4856_v27 = vld [vmem:[#allocation7 + $0x730] ss:$24 sps:$4 sm:$0xff]  }
 0x187   : > { %2424 = vmatprep.subr.bf16.mxu0 %v4804_v29  ;;  %2467 = vmatprep.subr.bf16.mxu1 %v4807_v30  ;;  %v4859_v28 = vld [vmem:[#allocation7 + $0xa28] ss:$24 sps:$4 sm:$0xff]   ;;  %v4864_v30 = vld [vmem:[#allocation7 + $0x764] ss:$24 sps:$4 sm:$0xff]  }
 0x18a   : > { %2425 = vmatpush1.bf16.msra.mxu0 %v4802_v33  ;;  %2468 = vmatpush1.bf16.msra.mxu1 %v4805_v37  ;;  %v4862_v37 = vld [vmem:[#allocation7 + $0x760] ss:$24 sps:$4 sm:$0xff]  }
 0x18b   : > { %2426 = vmatprep.subr.bf16.mxu0 %v4810_v39  ;;  %2469 = vmatprep.subr.bf16.mxu1 %v4813_v40  ;;  %v4870_v39 = vld [vmem:[#allocation7 + $0x794] ss:$24 sps:$4 sm:$0xff]  }
 0x18c   : > { %v4873_v40 = vld [vmem:[#allocation7 + $0xa8c] ss:$24 sps:$4 sm:$0xff]  }
 0x18e   : > { %2427 = vmatpush1.bf16.msra.mxu0 %v4808_v42  ;;  %2470 = vmatpush1.bf16.msra.mxu1 %v4811_v43  ;;  %v4879_v42 = vld [vmem:[#allocation7 + $0xabc] ss:$24 sps:$4 sm:$0xff]   ;;  %v4874_v43 = vld [vmem:[#allocation7 + $0x7c0] ss:$24 sps:$4 sm:$0xff]  }
 0x18f   : > { %2428 = vmatprep.subr.bf16.mxu0 %v4816_v48  ;;  %2471 = vmatprep.subr.bf16.mxu1 %v4819_v49  ;;  %v4883_v48 = vld [vmem:[#allocation7 + $0xae8] ss:$24 sps:$4 sm:$0xff]   ;;  %v4888_v49 = vld [vmem:[#allocation7 + $0x824] ss:$24 sps:$4 sm:$0xff]  }
 0x192   : > { %2429 = vmatpush1.bf16.msra.mxu0 %v4814_v35  ;;  %2472 = vmatpush1.bf16.msra.mxu1 %v4817_v51  ;;  %v4889_v35 = vld [vmem:[#allocation7 + $0xb18] ss:$24 sps:$4 sm:$0xff]   ;;  %v4894_v51 = vld [vmem:[#allocation7 + $0x854] ss:$24 sps:$4 sm:$0xff]  }
 0x193   : > { %2484 = vmatprep.subr.bf16.mxu0 %v4822_v55  ;;  %3203 = vmatprep.subr.bf16.mxu1 %v4825_v59  ;;  %v2539_v55 = vld [vmem:[#allocation2] sm:$0xf8] }
 0x194   : > { %v2543_v59 = vpack.c.bf16 %v5542_v36, %v2539_v55  ;;  %v4907_v36 = vld [vmem:[#allocation7 + $0xba8] ss:$24 sps:$4 sm:$0xff]   ;;  %v4963_v55 = vld [vmem:[#allocation7 + $0xbd4] ss:$24 sps:$4 sm:$0xff]  }
 0x195   : > { %2431 = vmatmul.mubr.bf16.vlgmr.msra.gmra.mrb[4].mxu0 %v5546_v3  ;;  %2474 = vmatmul.mubr.bf16.vlgmr.msra.gmra.mrb[4].mxu1 %v5546_v3 }
 0x196   : > { %2485 = vmatpush1.bf16.msra.mxu0 %v4820_v62  ;;  %3204 = vmatpush1.bf16.msra.mxu1 %v4823_v63  ;;  %v4903_v62 = vld [vmem:[#allocation7 + $0xb7c] ss:$24 sps:$4 sm:$0xff]   ;;  %v4898_v63 = vld [vmem:[#allocation7 + $0x880] ss:$24 sps:$4 sm:$0xff]   ;;  %v2645_v1 = vshrl.u32 %v2543_v59, 16  ;;  %v2648_v2 = vshll.u32 %v2543_v59, 16 }
 0x197   : > { %2486 = vmatprep.subr.bf16.mxu0 %v4828_v0  ;;  %3205 = vmatprep.subr.bf16.mxu1 %v4831_v4  ;;  %v4901_v0 = vld [vmem:[#allocation7 + $0xb78] ss:$24 sps:$4 sm:$0xff]   ;;  %v2653_v4 = vshrl.u32 %v2545_v60, 16  ;;  %v4969_v59 = vld [vmem:[#allocation7 + $0x944] ss:$24 sps:$4 sm:$0xff]  }
 0x198   : > { %3235 = vmatprep.mubr.bf16.mxu1 %v5551_v7  ;;  %2516 = vmatprep.mubr.bf16.mxu0 %v5537_v46  ;;  %v4852_v46 = vld [vmem:[#allocation7 + $0x704] ss:$24 sps:$4 sm:$0xff]  }
 0x19a   : > { %2487 = vmatpush1.bf16.msra.mxu0 %v4826_v5  ;;  %3206 = vmatpush1.bf16.msra.mxu1 %v4829_v6  ;;  %v2656_v5 = vshll.u32 %v2545_v60, 16  ;;  %v4906_v6 = vld [vmem:[#allocation7 + $0x8b4] ss:$24 sps:$4 sm:$0xff]   ;;  %v4967_v60 = vld [vmem:[#allocation7 + $0x940] ss:$24 sps:$4 sm:$0xff]  }
 0x19b   : > { %2488 = vmatprep.subr.bf16.mxu0 %v4834_v8  ;;  %3207 = vmatprep.subr.bf16.mxu1 %v4837_v9  ;;  %v4909_v8 = vld [vmem:[#allocation7 + $0xbac] ss:$24 sps:$4 sm:$0xff]   ;;  %v4904_v9 = vld [vmem:[#allocation7 + $0x8b0] ss:$24 sps:$4 sm:$0xff]  }
 0x19e   : > { %2489 = vmatpush1.bf16.msra.mxu0 %v4832_v10  ;;  %3208 = vmatpush1.bf16.msra.mxu1 %v4835_v11  ;;  %v2647_v10 = vrot.slane %v2645_v1, 1  ;;  %v2650_v11 = vrot.slane %v2648_v2, 2  ;;  %v4978_v1 = vld [vmem:[#allocation7 + $0x9d4] ss:$24 sps:$4 sm:$0xff]   ;;  %v4976_v2 = vld [vmem:[#allocation7 + $0x9d0] ss:$24 sps:$4 sm:$0xff]  }
 0x19f   : > { %2490 = vmatprep.subr.bf16.mxu0 %v4840_v12  ;;  %3209 = vmatprep.subr.bf16.mxu1 %v4843_v13  ;;  %v2655_v12 = vrot.slane %v2653_v4, 1  ;;  %v2658_v13 = vrot.slane %v2656_v5, 2  ;;  %v4981_v4 = vld [vmem:[#allocation7 + $0xa04] ss:$24 sps:$4 sm:$0xff]   ;;  %v4979_v5 = vld [vmem:[#allocation7 + $0xa00] ss:$24 sps:$4 sm:$0xff]  }
 0x1a2   : > { %2491 = vmatpush1.bf16.msra.mxu0 %v4838_v14  ;;  %3210 = vmatpush1.bf16.msra.mxu1 %v4841_v15  ;;  %v4912_v14 = vld [vmem:[#allocation7 + $0x8e4] ss:$24 sps:$4 sm:$0xff]  }
 0x1a3   : > { %2492 = vmatprep.subr.bf16.mxu0 %v4846_v16  ;;  %3211 = vmatprep.subr.bf16.mxu1 %v4849_v17  ;;  %v4915_v15 = vld [vmem:[#allocation7 + $0xbdc] ss:$24 sps:$4 sm:$0xff]   ;;  %v4910_v16 = vld [vmem:[#allocation7 + $0x8e0] ss:$24 sps:$4 sm:$0xff]  }
 0x1a4   : > { %v4913_v17 = vld [vmem:[#allocation7 + $0xbd8] ss:$24 sps:$4 sm:$0xff]  }
 0x1a6   : > { %2493 = vmatpush1.bf16.msra.mxu0 %v4844_v18  ;;  %3212 = vmatpush1.bf16.msra.mxu1 %v4847_v19  ;;  %v2651_v18 = vor.u32 %v2650_v11, %v2647_v10  ;;  %v2659_v19 = vor.u32 %v2658_v13, %v2655_v12  ;;  %v4988_v10 = vld [vmem:[#allocation7 + $0xa90] ss:$24 sps:$4 sm:$0xff]   ;;  %v4993_v11 = vld [vmem:[#allocation7 + $0xac4] ss:$24 sps:$4 sm:$0xff]   ;;  %v4991_v12 = vld [vmem:[#allocation7 + $0xac0] ss:$24 sps:$4 sm:$0xff]  }
 0x1a7   : > { %2494 = vmatprep.subr.bf16.mxu0 %v4852_v46  ;;  %3213 = vmatprep.subr.bf16.mxu1 %v4855_v20  ;;  %v4918_v46 = vld [vmem:[#allocation7 + $0x904] ss:$24 sps:$4 sm:$0xff]   ;;  %v4916_v20 = vld [vmem:[#allocation7 + $0x900] ss:$24 sps:$4 sm:$0xff]   ;;  %v4996_v13 = vld [vmem:[#allocation7 + $0xaf4] ss:$24 sps:$4 sm:$0xff]  }
 0x1a8   : > { %v5555_v25 = vpop.f32.mrb[0].mxu1 }
 0x1a9   : > { %v5557_v26 = vpop.f32.mrb[1].mxu1 }
 0x1aa   : > { %2495 = vmatpush1.bf16.msra.mxu0 %v4850_v21  ;;  %3214 = vmatpush1.bf16.msra.mxu1 %v4853_v22  ;;  %v5559_v29 = vpop.f32.mrb[2].mxu1  ;;  %v5565_v21 = vsel %vm2643_vm2, %v2651_v18, %v2659_v19  ;;  %v4921_v22 = vld [vmem:[#allocation7 + $0x934] ss:$24 sps:$4 sm:$0xff]   ;;  %v5000_v18 = vld [vmem:[#allocation7 + $0xb50] ss:$24 sps:$4 sm:$0xff]  }
 0x1ab   : > { %2496 = vmatprep.subr.bf16.mxu0 %v4858_v23  ;;  %3215 = vmatprep.subr.bf16.mxu1 %v4861_v24  ;;  %v5561_v33 = vpop.f32.mrb[3].mxu1  ;;  %v4919_v23 = vld [vmem:[#allocation7 + $0x930] ss:$24 sps:$4 sm:$0xff]   ;;  %v4924_v24 = vld [vmem:[#allocation7 + $0x964] ss:$24 sps:$4 sm:$0xff]  }
 0x1ac   : > { %v5005_v19 = vld [vmem:[#allocation7 + $0xb84] ss:$24 sps:$4 sm:$0xff]  }
 0x1ae   : > { %2497 = vmatpush1.bf16.msra.mxu0 %v4856_v27  ;;  %3216 = vmatpush1.bf16.msra.mxu1 %v4859_v28  ;;  %v4922_v27 = vld [vmem:[#allocation7 + $0x960] ss:$24 sps:$4 sm:$0xff]   ;;  %v4927_v28 = vld [vmem:[#allocation7 + $0x994] ss:$24 sps:$4 sm:$0xff]  }
 0x1af   : > { %2498 = vmatprep.subr.bf16.mxu0 %v4864_v30  ;;  %3217 = vmatprep.subr.bf16.mxu1 %v4867_v32  ;;  %v4925_v30 = vld [vmem:[#allocation7 + $0x990] ss:$24 sps:$4 sm:$0xff]   ;;  %v4930_v32 = vld [vmem:[#allocation7 + $0x9c4] ss:$24 sps:$4 sm:$0xff]  }
 0x1b2   : > { %2499 = vmatpush1.bf16.msra.mxu0 %v4862_v37  ;;  %3218 = vmatpush1.bf16.msra.mxu1 %v4865_v38  ;;  %v4928_v37 = vld [vmem:[#allocation7 + $0x9c0] ss:$24 sps:$4 sm:$0xff]   ;;  %v4933_v38 = vld [vmem:[#allocation7 + $0x9f4] ss:$24 sps:$4 sm:$0xff]  }
 0x1b3   : > { %2500 = vmatprep.subr.bf16.mxu0 %v4870_v39  ;;  %3219 = vmatprep.subr.bf16.mxu1 %v4873_v40  ;;  %v4936_v39 = vld [vmem:[#allocation7 + $0xa24] ss:$24 sps:$4 sm:$0xff]   ;;  %v4934_v40 = vld [vmem:[#allocation7 + $0xa20] ss:$24 sps:$4 sm:$0xff]  }
 0x1b6   : > { %2501 = vmatpush1.bf16.msra.mxu0 %v4868_v41  ;;  %3220 = vmatpush1.bf16.msra.mxu1 %v4871_v53  ;;  %v4939_v41 = vld [vmem:[#allocation7 + $0xa54] ss:$24 sps:$4 sm:$0xff]   ;;  %v4937_v53 = vld [vmem:[#allocation7 + $0xa50] ss:$24 sps:$4 sm:$0xff]  }
 0x1b7   : > { %2502 = vmatprep.subr.bf16.mxu0 %v4876_v54  ;;  %3221 = vmatprep.subr.bf16.mxu1 %v4879_v42  ;;  %v4942_v54 = vld [vmem:[#allocation7 + $0xa84] ss:$24 sps:$4 sm:$0xff]   ;;  %v4940_v42 = vld [vmem:[#allocation7 + $0xa80] ss:$24 sps:$4 sm:$0xff]  }
 0x1ba   : > { %2503 = vmatpush1.bf16.msra.mxu0 %v4874_v43  ;;  %3222 = vmatpush1.bf16.msra.mxu1 %v4877_v31  ;;  %v4945_v43 = vld [vmem:[#allocation7 + $0xab4] ss:$24 sps:$4 sm:$0xff]   ;;  %v4943_v31 = vld [vmem:[#allocation7 + $0xab0] ss:$24 sps:$4 sm:$0xff]  }
 0x1bb   : > { %2504 = vmatprep.subr.bf16.mxu0 %v4882_v44  ;;  %3223 = vmatprep.subr.bf16.mxu1 %v4885_v45  ;;  %v4948_v44 = vld [vmem:[#allocation7 + $0xae4] ss:$24 sps:$4 sm:$0xff]   ;;  %v4946_v45 = vld [vmem:[#allocation7 + $0xae0] ss:$24 sps:$4 sm:$0xff]  }
 0x1be   : > { %2505 = vmatpush1.bf16.msra.mxu0 %v4880_v47  ;;  %3224 = vmatpush1.bf16.msra.mxu1 %v4883_v48  ;;  %v4951_v47 = vld [vmem:[#allocation7 + $0xb14] ss:$24 sps:$4 sm:$0xff]   ;;  %v4949_v48 = vld [vmem:[#allocation7 + $0xb10] ss:$24 sps:$4 sm:$0xff]  }
 0x1bf   : > { %2506 = vmatprep.subr.bf16.mxu0 %v4888_v49  ;;  %3225 = vmatprep.subr.bf16.mxu1 %v4891_v34  ;;  %v4954_v49 = vld [vmem:[#allocation7 + $0xb44] ss:$24 sps:$4 sm:$0xff]   ;;  %v4952_v34 = vld [vmem:[#allocation7 + $0xb40] ss:$24 sps:$4 sm:$0xff]  }
 0x1c2   : > { %2507 = vmatpush1.bf16.msra.mxu0 %v4886_v50  ;;  %3226 = vmatpush1.bf16.msra.mxu1 %v4889_v35  ;;  %v4957_v50 = vld [vmem:[#allocation7 + $0xb74] ss:$24 sps:$4 sm:$0xff]   ;;  %v4955_v35 = vld [vmem:[#allocation7 + $0xb70] ss:$24 sps:$4 sm:$0xff]  }
 0x1c3   : > { %2508 = vmatprep.subr.bf16.mxu0 %v4894_v51  ;;  %3227 = vmatprep.subr.bf16.mxu1 %v4897_v52  ;;  %v4960_v51 = vld [vmem:[#allocation7 + $0xba4] ss:$24 sps:$4 sm:$0xff]   ;;  %v4958_v52 = vld [vmem:[#allocation7 + $0xba0] ss:$24 sps:$4 sm:$0xff]  }
 0x1c6   : > { %2509 = vmatpush1.bf16.msra.mxu0 %v4892_v57  ;;  %3228 = vmatpush1.bf16.msra.mxu1 %v4895_v58  ;;  %v4966_v57 = vld [vmem:[#allocation7 + $0x914] ss:$24 sps:$4 sm:$0xff]   ;;  %v4964_v58 = vld [vmem:[#allocation7 + $0x910] ss:$24 sps:$4 sm:$0xff]  }
 0x1c7   : > { %2510 = vmatprep.subr.bf16.mxu0 %v4900_v61  ;;  %3229 = vmatprep.subr.bf16.mxu1 %v4903_v62  ;;  %v4972_v61 = vld [vmem:[#allocation7 + $0x974] ss:$24 sps:$4 sm:$0xff]   ;;  %v4970_v62 = vld [vmem:[#allocation7 + $0x970] ss:$24 sps:$4 sm:$0xff]  }
 0x1ca   : > { %2511 = vmatpush1.bf16.msra.mxu0 %v4898_v63  ;;  %3230 = vmatpush1.bf16.msra.mxu1 %v4901_v0  ;;  %v4975_v63 = vld [vmem:[#allocation7 + $0x9a4] ss:$24 sps:$4 sm:$0xff]   ;;  %v4973_v0 = vld [vmem:[#allocation7 + $0x9a0] ss:$24 sps:$4 sm:$0xff]  }
 0x1cb   : > { %2512 = vmatprep.subr.bf16.mxu0 %v4906_v6  ;;  %3231 = vmatprep.subr.bf16.mxu1 %v4909_v8  ;;  %v4984_v6 = vld [vmem:[#allocation7 + $0xa34] ss:$24 sps:$4 sm:$0xff]   ;;  %v4987_v8 = vld [vmem:[#allocation7 + $0xa64] ss:$24 sps:$4 sm:$0xff]  }
 0x1ce   : > { %2513 = vmatpush1.bf16.msra.mxu0 %v4904_v9  ;;  %3232 = vmatpush1.bf16.msra.mxu1 %v4907_v36  ;;  %v4985_v9 = vld [vmem:[#allocation7 + $0xa60] ss:$24 sps:$4 sm:$0xff]   ;;  %v4990_v36 = vld [vmem:[#allocation7 + $0xa94] ss:$24 sps:$4 sm:$0xff]  }
 0x1cf   : > { %2514 = vmatprep.subr.bf16.mxu0 %v4912_v14  ;;  %3233 = vmatprep.subr.bf16.mxu1 %v4915_v15  ;;  %v4994_v14 = vld [vmem:[#allocation7 + $0xaf0] ss:$24 sps:$4 sm:$0xff]   ;;  %v4999_v15 = vld [vmem:[#allocation7 + $0xb24] ss:$24 sps:$4 sm:$0xff]  }
 0x1d2   : > { %2515 = vmatpush1.bf16.msra.mxu0 %v4910_v16  ;;  %3234 = vmatpush1.bf16.msra.mxu1 %v4913_v17  ;;  %v4997_v16 = vld [vmem:[#allocation7 + $0xb20] ss:$24 sps:$4 sm:$0xff]   ;;  %v5002_v17 = vld [vmem:[#allocation7 + $0xb54] ss:$24 sps:$4 sm:$0xff]  }
 0x1d3   : > { %3160 = vmatprep.subr.bf16.mxu0 %v4918_v46  ;;  %v5003_v46 = vld [vmem:[#allocation7 + $0xb80] ss:$24 sps:$4 sm:$0xff]  }
 0x1d5   : > { %3236 = vmatmul.mubr.bf16.vlgmr.msra.gmra.mrb[4].mxu1 %v5565_v21  ;;  %2517 = vmatmul.mubr.bf16.vlgmr.msra.gmra.mrb[0].mxu0 %v5546_v3  ;;  %v4931_v3 = vld [vmem:[#allocation7 + $0x9f0] ss:$24 sps:$4 sm:$0xff]  }
 0x1d6   : > { %3161 = vmatpush1.bf16.msra.mxu0 %v4916_v20  ;;  %3192 = vmatprep.mubr.bf16.mxu0 %v5551_v7  ;;  %v5008_v20 = vld [vmem:[#allocation7 + $0xbb4] ss:$24 sps:$4 sm:$0xff]  }
 0x1d7   : > { %3162 = vmatprep.subr.bf16.mxu0 %v4921_v22  ;;  %v5006_v22 = vld [vmem:[#allocation7 + $0xbb0] ss:$24 sps:$4 sm:$0xff]  }
 0x1da   : > { %3163 = vmatpush1.bf16.msra.mxu0 %v4919_v23  ;;  %v5011_v23 = vld [vmem:[#allocation7 + $0xbe4] ss:$24 sps:$4 sm:$0xff]  }
 0x1db   : > { %3164 = vmatprep.subr.bf16.mxu0 %v4924_v24  ;;  %v5009_v24 = vld [vmem:[#allocation7 + $0xbe0] ss:$24 sps:$4 sm:$0xff]  }
 0x1de   : > { %3165 = vmatpush1.bf16.msra.mxu0 %v4922_v27  ;;  %v5012_v27 = vld [vmem:[#allocation8 + $0x40] sm:$0xff]  }
 0x1df   : > { %3166 = vmatprep.subr.bf16.mxu0 %v4927_v28  ;;  %v5013_v28 = vld [vmem:[#allocation8] sm:$0xff]   ;;  %4259 = vmatprep.subr.bf16.mxu1 %v5012_v27 }
 0x1e0   : > { %4260 = vmatpush3.bf16.msra.mxu1 %v5013_v28 }
 0x1e2   : > { %3167 = vmatpush1.bf16.msra.mxu0 %v4925_v30  ;;  %v5014_v30 = vld [vmem:[#allocation8 + $0x48] sm:$0xff]  }
 0x1e3   : > { %3168 = vmatprep.subr.bf16.mxu0 %v4930_v32  ;;  %v5015_v32 = vld [vmem:[#allocation8 + $0x8] sm:$0xff]   ;;  %4261 = vmatprep.subr.bf16.mxu1 %v5014_v30 }
 0x1e4   : > { %4262 = vmatpush3.bf16.msra.mxu1 %v5015_v32 }
 0x1e6   : > { %3169 = vmatpush1.bf16.msra.mxu0 %v4928_v37  ;;  %v5016_v37 = vld [vmem:[#allocation8 + $0x50] sm:$0xff]  }
 0x1e7   : > { %3170 = vmatprep.subr.bf16.mxu0 %v4933_v38  ;;  %v5017_v38 = vld [vmem:[#allocation8 + $0x10] sm:$0xff]   ;;  %4263 = vmatprep.subr.bf16.mxu1 %v5016_v37 }
 0x1e8   : > { %4264 = vmatpush3.bf16.msra.mxu1 %v5017_v38 }
 0x1ea   : > { %3171 = vmatpush1.bf16.msra.mxu0 %v4931_v3 }
 0x1eb   : > { %3172 = vmatprep.subr.bf16.mxu0 %v4936_v39 }
 0x1ee   : > { %3173 = vmatpush1.bf16.msra.mxu0 %v4934_v40 }
 0x1ef   : > { %3174 = vmatprep.subr.bf16.mxu0 %v4939_v41  ;;  %v5018_v41 = vld [vmem:[#allocation8 + $0x58] sm:$0xff]  }
 0x1f0   : > { %4265 = vmatprep.subr.bf16.mxu1 %v5018_v41 }
 0x1f2   : > { %3175 = vmatpush1.bf16.msra.mxu0 %v4937_v53 }
 0x1f3   : > { %3176 = vmatprep.subr.bf16.mxu0 %v4942_v54  ;;  %v5019_v54 = vld [vmem:[#allocation8 + $0x18] sm:$0xff]  }
 0x1f4   : > { %4266 = vmatpush3.bf16.msra.mxu1 %v5019_v54 }
 0x1f6   : > { %3177 = vmatpush1.bf16.msra.mxu0 %v4940_v42  ;;  %v5021_v42 = vld [vmem:[#allocation8 + $0x20] sm:$0xff]  }
 0x1f7   : > { %3178 = vmatprep.subr.bf16.mxu0 %v4945_v43  ;;  %v5022_v43 = vld [vmem:[#allocation8 + $0x68] sm:$0xff]  }
 0x1fa   : > { %3179 = vmatpush1.bf16.msra.mxu0 %v4943_v31  ;;  %v5023_v31 = vld [vmem:[#allocation8 + $0x28] sm:$0xff]  }
 0x1fb   : > { %3180 = vmatprep.subr.bf16.mxu0 %v4948_v44  ;;  %v5024_v44 = vld [vmem:[#allocation8 + $0x70] sm:$0xff]  }
 0x1fe   : > { %3181 = vmatpush1.bf16.msra.mxu0 %v4946_v45  ;;  %v5025_v45 = vld [vmem:[#allocation8 + $0x30] sm:$0xff]  }
 0x1ff   : > { %3182 = vmatprep.subr.bf16.mxu0 %v4951_v47  ;;  %v5026_v47 = vld [vmem:[#allocation8 + $0x78] sm:$0xff]  }
 0x202   : > { %3183 = vmatpush1.bf16.msra.mxu0 %v4949_v48  ;;  %v5027_v48 = vld [vmem:[#allocation8 + $0x38] sm:$0xff]  }
 0x203   : > { %3184 = vmatprep.subr.bf16.mxu0 %v4954_v49  ;;  %v5245_v49 = vmov 0.0  }
 0x206   : > { %3185 = vmatpush1.bf16.msra.mxu0 %v4952_v34 }
 0x207   : > { %3186 = vmatprep.subr.bf16.mxu0 %v4957_v50 }
 0x20a   : > { %3187 = vmatpush1.bf16.msra.mxu0 %v4955_v35 }
 0x20b   : > { %3188 = vmatprep.subr.bf16.mxu0 %v4960_v51 }
 0x20e   : > { %3189 = vmatpush1.bf16.msra.mxu0 %v4958_v52 }
 0x20f   : > { %3190 = vmatprep.subr.bf16.mxu0 %v4963_v55 }
 0x212   : > { %3191 = vmatpush1.bf16.msra.mxu0 %v4961_v56 }
 0x213   : > { %3246 = vmatprep.subr.bf16.mxu0 %v4966_v57 }
 0x215   : > { %3193 = vmatmul.mubr.bf16.vlgmr.msra.gmra.mrb[4].mxu0 %v5565_v21 }
 0x216   : > { %3247 = vmatpush1.bf16.msra.mxu0 %v4964_v58  ;;  %3278 = vmatprep.mubr.bf16.mxu0 %v5551_v7  ;;  %v4982_v7 = vld [vmem:[#allocation7 + $0xa30] ss:$24 sps:$4 sm:$0xff]  }
 0x217   : > { %3248 = vmatprep.subr.bf16.mxu0 %v4969_v59 }
 0x21a   : > { %3249 = vmatpush1.bf16.msra.mxu0 %v4967_v60 }
 0x21b   : > { %3250 = vmatprep.subr.bf16.mxu0 %v4972_v61 }
 0x21e   : > { %3251 = vmatpush1.bf16.msra.mxu0 %v4970_v62 }
 0x21f   : > { %3252 = vmatprep.subr.bf16.mxu0 %v4975_v63 }
 0x222   : > { %3253 = vmatpush1.bf16.msra.mxu0 %v4973_v0 }
 0x223   : > { %3254 = vmatprep.subr.bf16.mxu0 %v4978_v1 }
 0x226   : > { %3255 = vmatpush1.bf16.msra.mxu0 %v4976_v2 }
 0x227   : > { %3256 = vmatprep.subr.bf16.mxu0 %v4981_v4 }
 0x22a   : > { %3257 = vmatpush1.bf16.msra.mxu0 %v4979_v5 }
 0x22b   : > { %3258 = vmatprep.subr.bf16.mxu0 %v4984_v6 }
 0x22e   : > { %3259 = vmatpush1.bf16.msra.mxu0 %v4982_v7 }
 0x22f   : > { %3260 = vmatprep.subr.bf16.mxu0 %v4987_v8 }
 0x232   : > { %3261 = vmatpush1.bf16.msra.mxu0 %v4985_v9 }
 0x233   : > { %3262 = vmatprep.subr.bf16.mxu0 %v4990_v36 }
 0x236   : > { %3263 = vmatpush1.bf16.msra.mxu0 %v4988_v10 }
 0x237   : > { %3264 = vmatprep.subr.bf16.mxu0 %v4993_v11 }
 0x23a   : > { %3265 = vmatpush1.bf16.msra.mxu0 %v4991_v12 }
 0x23b   : > { %3266 = vmatprep.subr.bf16.mxu0 %v4996_v13 }
 0x23e   : > { %3267 = vmatpush1.bf16.msra.mxu0 %v4994_v14 }
 0x23f   : > { %3268 = vmatprep.subr.bf16.mxu0 %v4999_v15 }
 0x242   : > { %3269 = vmatpush1.bf16.msra.mxu0 %v4997_v16 }
 0x243   : > { %3270 = vmatprep.subr.bf16.mxu0 %v5002_v17 }
 0x246   : > { %3271 = vmatpush1.bf16.msra.mxu0 %v5000_v18 }
 0x247   : > { %3272 = vmatprep.subr.bf16.mxu0 %v5005_v19 }
 0x24a   : > { %3273 = vmatpush1.bf16.msra.mxu0 %v5003_v46 }
 0x24b   : > { %3274 = vmatprep.subr.bf16.mxu0 %v5008_v20 }
 0x24e   : > { %3275 = vmatpush1.bf16.msra.mxu0 %v5006_v22 }
 0x24f   : > { %3276 = vmatprep.subr.bf16.mxu0 %v5011_v23 }
 0x252   : > { %3277 = vmatpush1.bf16.msra.mxu0 %v5009_v24 }
 0x255   : > { %3279 = vmatmul.mubr.bf16.vlgmr.msra.gmra.mrb[0].mxu0 %v5565_v21  ;;  %v5020_v21 = vld [vmem:[#allocation8 + $0x60] sm:$0xff]  }
 0x256   : > { %4267 = vmatprep.subr.bf16.mxu1 %v5020_v21 }
 0x257   : > { %4268 = vmatpush3.bf16.msra.mxu1 %v5021_v42 }
 0x258   : > { %4269 = vmatprep.subr.bf16.mxu1 %v5022_v43 }
 0x25b   : > { %4270 = vmatpush3.bf16.msra.mxu1 %v5023_v31 }
 0x25c   : > { %4271 = vmatprep.subr.bf16.mxu1 %v5024_v44 }
 0x25f   : > { %4272 = vmatpush3.bf16.msra.mxu1 %v5025_v45  ;;  %v5028_v45 = vld [vmem:[#allocation8 + $0x80] sm:$0xff]  }
 0x260   : > { %4273 = vmatprep.subr.bf16.mxu1 %v5026_v47 }
 0x263   : > { %4274 = vmatpush3.bf16.msra.mxu1 %v5027_v48 }
 0x264   : > { %4290 = vmatprep.subr.bf16.mxu1 %v5245_v49 }
 0x2a8   : > { %v3237_v3 = vpop.f32.mrb[4].mxu1 }
 0x2a9   : > { %v3239_v39 = vpop.f32.mrb[5].mxu1  ;;  %v3303_v11 = vmul.f32 %v3237_v3, %v3237_v3 }
 0x2aa   : > { %v5573_v40 = vpop.f32.mrb[6].mxu1  ;;  %v3307_v55 = vmul.f32 %v3239_v39, %v3239_v39 }
 0x2ab   : > { %v3243_v53 = vpop.f32.mrb[7].mxu1  ;;  %v3306_v18 = vmul.f32 %v5573_v40, %v5573_v40 }
 0x2ac   : > { %v3310_v60 = vmul.f32 %v3243_v53, %v3243_v53 }
 0x2e8   : > { %v3194_v34 = vpop.f32.mrb[4].mxu0 }
 0x2e9   : > { %v4310_v50 = vadd.f32 %v3194_v34, %v5555_v25  ;;  %v3196_v35 = vpop.f32.mrb[5].mxu0 }
 0x2ea   : > { %v4311_v51 = vadd.f32 %v3196_v35, %v5557_v26  ;;  %v3198_v52 = vpop.f32.mrb[6].mxu0  ;;  %v5030_v35 = vld [vmem:[#allocation8 + $0x90] sm:$0xff]  }
 0x2eb   : > { %v3301_v56 = vmul.f32 %v4310_v50, %v4310_v50  ;;  %v4312_v57 = vadd.f32 %v3198_v52, %v5559_v29  ;;  %v3200_v58 = vpop.f32.mrb[7].mxu0  ;;  %v5029_v50 = vld [vmem:[#allocation8 + $0x88] sm:$0xff]   ;;  %v5032_v52 = vld [vmem:[#allocation8 + $0xa0] sm:$0xff]  }
 0x2ec   : > { %v4313_v59 = vadd.f32 %v3200_v58, %v5561_v33  ;;  %v3302_v9 = vmul.f32 %v4311_v51, %v4311_v51  ;;  %v5031_v51 = vld [vmem:[#allocation8 + $0x98] sm:$0xff]  }
 0x2ed   : > { %v3313_v61 = vadd.f32 %v3307_v55, %v3301_v56  ;;  %v3304_v62 = vmul.f32 %v4312_v57, %v4312_v57  ;;  %v5033_v55 = vld [vmem:[#allocation8 + $0xa8] sm:$0xff]   ;;  %v5034_v56 = vld [vmem:[#allocation8 + $0xb0] sm:$0xff]   ;;  %v5035_v57 = vld [vmem:[#allocation8 + $0xb8] sm:$0xff]  }
 0x2ee   : > { %v3305_v14 = vmul.f32 %v4313_v59, %v4313_v59 }
 0x2ef   : > { %5036 = vrsqrt.f32 %v3313_v61  ;;  %v3316_v63 = vadd.f32 %v3310_v60, %v3304_v62  ;;  %vm3321_vm3 = vcmp.eq.f32.partialorder %v3313_v61, inf  ;;  %v3324_v4 = vand.u32 2147483648, %v3313_v61 }
 0x2f0   : > { %vm3323_vm5 = vcmp.eq.f32.partialorder %v3313_v61, 0.0 }
 0x2f1   : > { %5038 = vrsqrt.f32 %v3316_v63  ;;  %vm3342_vm4 = vcmp.eq.f32.partialorder %v3316_v63, inf  ;;  %v3345_v5 = vand.u32 2147483648, %v3316_v63  ;;  %vm3344_vm6 = vcmp.eq.f32.partialorder %v3316_v63, 0.0 }
 0x2f9   : > { %v5037_v0 = vpop.eup %5036 }
 0x2fa   : > { %v3320_v1 = vmul.f32 %v5037_v0, %v3313_v61 }
 0x2fb   : > { %v5039_v25 = vpop.eup %5038 }
 0x2fc   : > { %v3322_v2 = vsel %vm3321_vm3, %v3313_v61, %v3320_v1  ;;  %v3341_v26 = vmul.f32 %v5039_v25, %v3316_v63 }
 0x2fd   : > { %v3325_v6 = vsel %vm3323_vm5, %v3324_v4, %v3322_v2 }
 0x2fe   : > { %v3343_v29 = vsel %vm3342_vm4, %v3316_v63, %v3341_v26 }
 0x2ff   : > { %v3346_v33 = vsel %vm3344_vm6, %v3345_v5, %v3343_v29 }
 0x300   : > { %v3361_v7 = vpack.c.bf16 %v3346_v33, %v3325_v6 }
 0x328   : > { %v3280_v8 = vpop.f32.mrb[0].mxu0 }
 0x329   : > { %v3308_v36 = vmul.f32 %v3280_v8, %v3280_v8  ;;  %v3282_v10 = vpop.f32.mrb[1].mxu0 }
 0x32a   : > { %v3309_v12 = vmul.f32 %v3282_v10, %v3282_v10  ;;  %v3284_v13 = vpop.f32.mrb[2].mxu0 }
 0x32b   : > { %v3314_v15 = vadd.f32 %v3308_v36, %v3302_v9  ;;  %v3311_v16 = vmul.f32 %v3284_v13, %v3284_v13  ;;  %v3286_v17 = vpop.f32.mrb[3].mxu0 }
 0x32c   : > { %v3315_v19 = vadd.f32 %v3309_v12, %v3303_v11  ;;  %v3312_v46 = vmul.f32 %v3286_v17, %v3286_v17 }
 0x32d   : > { %5040 = vrsqrt.f32 %v3314_v15  ;;  %v3317_v20 = vadd.f32 %v3311_v16, %v3305_v14  ;;  %vm3328_vm7 = vcmp.eq.f32.partialorder %v3314_v15, inf  ;;  %vm3330_vm8 = vcmp.eq.f32.partialorder %v3314_v15, 0.0 }
 0x32e   : > { %5042 = vrsqrt.f32 %v3315_v19  ;;  %v3318_v22 = vadd.f32 %v3312_v46, %v3306_v18  ;;  %v3331_v30 = vand.u32 2147483648, %v3314_v15  ;;  %vm3335_vm9 = vcmp.eq.f32.partialorder %v3315_v19, inf }
 0x32f   : > { %5044 = vrsqrt.f32 %v3317_v20  ;;  %vm3349_vm10 = vcmp.eq.f32.partialorder %v3317_v20, inf  ;;  %vm3351_vm11 = vcmp.eq.f32.partialorder %v3317_v20, 0.0  ;;  %v3352_v39 = vand.u32 2147483648, %v3317_v20 }
 0x330   : > { %5046 = vrsqrt.f32 %v3318_v22  ;;  %vm3337_vm12 = vcmp.eq.f32.partialorder %v3315_v19, 0.0  ;;  %v3338_v54 = vand.u32 2147483648, %v3315_v19  ;;  %vm3356_vm13 = vcmp.eq.f32.partialorder %v3318_v22, inf }
 0x331   : > { %v3359_v21 = vand.u32 2147483648, %v3318_v22  ;;  %vm3358_vm14 = vcmp.eq.f32.partialorder %v3318_v22, 0.0 }
 0x337   : > { %v5041_v23 = vpop.eup %5040 }
 0x338   : > { %v5043_v24 = vpop.eup %5042  ;;  %v3327_v27 = vmul.f32 %v5041_v23, %v3314_v15 }
 0x339   : > { %v5045_v28 = vpop.eup %5044  ;;  %v3334_v32 = vmul.f32 %v5043_v24, %v3315_v19 }
 0x33a   : > { %v5047_v37 = vpop.eup %5046  ;;  %v3329_v38 = vsel %vm3328_vm7, %v3314_v15, %v3327_v27  ;;  %v3348_v3 = vmul.f32 %v5045_v28, %v3317_v20 }
 0x33b   : > { %v3336_v40 = vsel %vm3335_vm9, %v3315_v19, %v3334_v32  ;;  %v3355_v41 = vmul.f32 %v5047_v37, %v3318_v22  ;;  %v3332_v42 = vsel %vm3330_vm8, %v3331_v30, %v3329_v38 }
 0x33c   : > { %v3350_v53 = vsel %vm3349_vm10, %v3317_v20, %v3348_v3  ;;  %v3339_v47 = vsel %vm3337_vm12, %v3338_v54, %v3336_v40 }
 0x33d   : > { %v3353_v43 = vsel %vm3351_vm11, %v3352_v39, %v3350_v53  ;;  %v3357_v31 = vsel %vm3356_vm13, %v3318_v22, %v3355_v41 }
 0x33e   : > { %v3362_v44 = vpack.c.bf16 %v3353_v43, %v3332_v42  ;;  %v3360_v48 = vsel %vm3358_vm14, %v3359_v21, %v3357_v31 }
 0x33f   : > { %v3363_v34 = vpack.c.bf16 %v3360_v48, %v3339_v47 }
 0x340   : > { %3588 = vmatprep.mubr.bf16.mxu1 %v3362_v44 }
 0x341   : > { %3589 = vmatmul.mubr.bf16.vlgmr.msra.gmra.mrb[8].mxu1 %v3361_v7 }
 0x342   : > { %4291 = vmatpush3.bf16.msra.mxu1 %v5028_v45  ;;  %4306 = vmatprep.mubr.msk.bf16.mxu1 %vm5246_vm15, %v5245_v49 }
 0x343   : > { %4292 = vmatprep.subr.bf16.mxu1 %v5245_v49 }
 0x346   : > { %4293 = vmatpush3.bf16.msra.mxu1 %v5029_v50 }
 0x347   : > { %4294 = vmatprep.subr.bf16.mxu1 %v5245_v49 }
 0x34a   : > { %4295 = vmatpush3.bf16.msra.mxu1 %v5030_v35 }
 0x34b   : > { %4296 = vmatprep.subr.bf16.mxu1 %v5245_v49 }
 0x34e   : > { %4297 = vmatpush3.bf16.msra.mxu1 %v5031_v51 }
 0x34f   : > { %4298 = vmatprep.subr.bf16.mxu1 %v5245_v49 }
 0x352   : > { %4299 = vmatpush3.bf16.msra.mxu1 %v5032_v52 }
 0x353   : > { %4300 = vmatprep.subr.bf16.mxu1 %v5245_v49 }
 0x356   : > { %4301 = vmatpush3.bf16.msra.mxu1 %v5033_v55 }
 0x357   : > { %4302 = vmatprep.subr.bf16.mxu1 %v5245_v49 }
 0x35a   : > { %4303 = vmatpush3.bf16.msra.mxu1 %v5034_v56 }
 0x35b   : > { %4304 = vmatprep.subr.bf16.mxu1 %v5245_v49 }
 0x35e   : > { %4305 = vmatpush3.bf16.msra.mxu1 %v5035_v57 }
 0x361   : > { %4307 = vmatmul.mubr.bf16.vlgmr.msra.gmra.mrb[12].mxu1 %v3363_v34 }
 0x414   : > { %v4275_v58 = vpop.f32.mrb[8].mxu1 }
 0x415   : > { %v4276_v59 = vpop.f32.mrb[9].mxu1 }
 0x416   : > { %v4277_v60 = vadd.f32 %v4276_v59, %v4275_v58  ;;  %v4278_v61 = vpop.f32.mrb[10].mxu1 }
 0x417   : > { %v4279_v62 = vpop.f32.mrb[11].mxu1 }
 0x418   : > { %v4280_v63 = vadd.f32 %v4279_v62, %v4278_v61 }
 0x434   : > { %v3631_v0 = vpop.f32.mrb[12].mxu1 }
 0x435   : > { %v3632_v1 = vadd.f32 %v4277_v60, %v3631_v0  ;;  %v4308_v25 = vpop.f32.mrb[13].mxu1 }
 0x436   : > { %v3634_v2 = vpop.f32.mrb[14].mxu1 }
 0x437   : > { %v3638_v26 = vmax.f32 %v3632_v1, 1e-05  ;;  %v3635_v4 = vadd.f32 %v4280_v63, %v3634_v2  ;;  %v4309_v5 = vpop.f32.mrb[15].mxu1 }
 0x439   : > { %5048 = vlog2.f32 %v3638_v26  ;;  %v3639_v29 = vmax.f32 %v3635_v4, 1e-05 }
 0x43b   : > { %5050 = vlog2.f32 %v3639_v29 }
 0x443   : > { %v5049_v49 = vpop.eup %5048 }
 0x444   : > { %v3641_v6 = vmul.f32 0.6931472, %v5049_v49 }
 0x445   : > { %v5051_v33 = vpop.eup %5050 }
 0x446   : > { %3644 = vxpose.xlu0.b32.start [1/2] (short) %v3641_v6, 128  ;;  %v3643_v7 = vmul.f32 0.6931472, %v5051_v33 }
 0x44a   : > { %3645 = vxpose.xlu0.b32.end [2/2] (short) %v3643_v7, 128 }
 0x4c6   : > { %v3660_v8 = vpop.trf.xlu0 }
 0x4c7   : > { %3677 = vst.msk [vmem:[%s5596_s15] sm:$0xff] %vm3676_vm0, %v3660_v8 }
 0x4ca   : > { %v3661_v9 = vpop.trf.xlu0 }
 0x4cb   : > { %3678 = vst.msk [vmem:[%s5596_s15 + $0x8] sm:$0xff] %vm3676_vm0, %v3661_v9 }
 0x4ce   : > { %v3662_v36 = vpop.trf.xlu0 }
 0x4cf   : > { %3679 = vst.msk [vmem:[%s5596_s15 + $0x10] sm:$0xff] %vm3676_vm0, %v3662_v36 }
 0x4d2   : > { %v3663_v10 = vpop.trf.xlu0 }
 0x4d3   : > { %3680 = vst.msk [vmem:[%s5596_s15 + $0x18] sm:$0xff] %vm3676_vm0, %v3663_v10 }
 0x4d6   : > { %v3664_v11 = vpop.trf.xlu0 }
 0x4d7   : > { %3681 = vst.msk [vmem:[%s5596_s15 + $0x20] sm:$0xff] %vm3676_vm0, %v3664_v11 }
 0x4da   : > { %v3665_v12 = vpop.trf.xlu0 }
 0x4db   : > { %3682 = vst.msk [vmem:[%s5596_s15 + $0x28] sm:$0xff] %vm3676_vm0, %v3665_v12 }
 0x4de   : > { %v3666_v13 = vpop.trf.xlu0 }
 0x4df   : > { %3683 = vst.msk [vmem:[%s5596_s15 + $0x30] sm:$0xff] %vm3676_vm0, %v3666_v13 }
 0x4e2   : > { %v3667_v14 = vpop.trf.xlu0 }
 0x4e3   : > { %3684 = vst.msk [vmem:[%s5596_s15 + $0x38] sm:$0xff] %vm3676_vm0, %v3667_v14 }
 0x4e6   : > { %v3668_v15 = vpop.trf.xlu0 }
 0x4e7   : > { %3685 = vst.msk [vmem:[%s5596_s15 + $0x40] sm:$0xff] %vm3676_vm0, %v3668_v15 }
 0x4ea   : > { %v3669_v16 = vpop.trf.xlu0 }
 0x4eb   : > { %3686 = vst.msk [vmem:[%s5596_s15 + $0x48] sm:$0xff] %vm3676_vm0, %v3669_v16 }
 0x4ee   : > { %v3670_v17 = vpop.trf.xlu0 }
 0x4ef   : > { %3687 = vst.msk [vmem:[%s5596_s15 + $0x50] sm:$0xff] %vm3676_vm0, %v3670_v17 }
 0x4f2   : > { %v3671_v18 = vpop.trf.xlu0 }
 0x4f3   : > { %3688 = vst.msk [vmem:[%s5596_s15 + $0x58] sm:$0xff] %vm3676_vm0, %v3671_v18 }
 0x4f6   : > { %v3672_v19 = vpop.trf.xlu0 }
 0x4f7   : > { %3689 = vst.msk [vmem:[%s5596_s15 + $0x60] sm:$0xff] %vm3676_vm0, %v3672_v19 }
 0x4fa   : > { %v3673_v46 = vpop.trf.xlu0 }
 0x4fb   : > { %3690 = vst.msk [vmem:[%s5596_s15 + $0x68] sm:$0xff] %vm3676_vm0, %v3673_v46 }
 0x4fe   : > { %v3674_v20 = vpop.trf.xlu0 }
 0x4ff   : > { %3691 = vst.msk [vmem:[%s5596_s15 + $0x70] sm:$0xff] %vm3676_vm0, %v3674_v20 }
 0x502   : > { %v3675_v22 = vpop.trf.xlu0 }
 0x503   : > { %3692 = vst.msk [vmem:[%s5596_s15 + $0x78] sm:$0xff] %vm3676_vm0, %v3675_v22 }
 0x504 PF: > { %s21_s20 = sadd.s32 1, %s5233_s20   ;;  %s5671_s15 = smov %s5217_s16 }
 0x505   : > { %p18_p5 = scmp.ge.s32.totalorder %s21_s20, 4   ;;  %s5672_s16 = smov %s5221_s17 }
 0x506   : > { %s5673_s17 = smov %s5393_s28  ;;  %s5674_s18 = smov %s5229_s19 }
 0x507   : > { %s5675_s19 = smov %s5677_s13  ;;  %20 = sbr.rel (!%p18_p5) target bundleno = 10 (0xa), region = 97 }
 0x50e   :  { %3720 = vsyncpa [#allocation4], 1 }
 0x50f   :  { %3722 = vsyncpa [#allocation4 + $0x1], 1 }
 0x510   :  { %3723 = vsyncpa [#allocation6], 1 }
 0x511   :  { %3725 = vsyncpa [#allocation6 + $0x1], 1 }
 0x512   :  { %3726 = vsyncpa [#allocation9], 1 }

</bundles_post_ra>
